<compile_context>
chip_gen: v6e
topology: v6e:2x2x1
jax: 0.10.0
libtpu: 0.0.40
codegen_flags: <defaults>
</compile_context>

<pallas_src>
import functools

import jax
import jax.numpy as jnp
from jax.experimental import pallas as pl
from jax.experimental.pallas import tpu as pltpu

HIDDEN = [64, 128, 128, 64]
IN_DIM = 2
OUT_DIM = 1


def _softplus(x):
    # Matches torch.nn.functional.softplus (beta=1, threshold=20).
    return jnp.where(x > 20.0, x, jnp.log1p(jnp.exp(jnp.minimum(x, 20.0))))


def _pinn_mlp_kernel(r_ref, t_ref,
                     w0_ref, b0_ref,
                     w1_ref, b1_ref,
                     w2_ref, b2_ref,
                     w3_ref, b3_ref,
                     w4_ref, b4_ref,
                     o_ref, *, act_dtype):
    r = r_ref[...]                       # (1, tile) f32
    t = t_ref[...]                       # (1, tile) f32

    # Layer 0 on the VPU: outer-product broadcast FMA in f32 (raw inputs are
    # O(1e3); never round them to bf16).
    w0 = w0_ref[...]                     # (64, 2) f32
    pre0 = w0[:, 0:1] * r + w0[:, 1:2] * t + b0_ref[...]    # (64, tile) f32
    h = jnp.tanh(pre0.astype(act_dtype))                     # (64, tile)

    def dense_tanh(w_ref, b_ref, h):
        # MXU operands in w_ref.dtype (bf16 or f32), f32 accumulation,
        # f32 bias add, tanh in act_dtype.
        p = jnp.dot(w_ref[...], h.astype(w_ref.dtype),
                    preferred_element_type=jnp.float32)
        p = p + b_ref[...]
        return jnp.tanh(p.astype(act_dtype))

    h = dense_tanh(w1_ref, b1_ref, h)    # (128, tile)
    h = dense_tanh(w2_ref, b2_ref, h)    # (128, tile)
    h = dense_tanh(w3_ref, b3_ref, h)    # (64,  tile)

    y = jnp.dot(w4_ref[...], h.astype(w4_ref.dtype),
                preferred_element_type=jnp.float32)
    y = y + b4_ref[...]                  # (1, tile) f32

    # Lane-dense store: (1, tile) with tile a multiple of 128.
    o_ref[...] = _softplus(y)


def init_params(key):
    """Deterministic init mimicking torch.nn.Linear default U[-1/sqrt(fan_in), +].

    Weights are stored in PyTorch layout (out, in); biases as (out, 1).
    """
    dims = [IN_DIM] + HIDDEN + [OUT_DIM]
    params = []
    for i in range(len(dims) - 1):
        fan_in, fan_out = dims[i], dims[i + 1]
        key, kw, kb = jax.random.split(key, 3)
        bound = 1.0 / jnp.sqrt(jnp.float32(fan_in))
        w = jax.random.uniform(kw, (fan_out, fan_in), jnp.float32, -bound, bound)
        b = jax.random.uniform(kb, (fan_out, 1), jnp.float32, -bound, bound)
        params.append((w, b))
    return params


@functools.partial(jax.jit,
                   static_argnames=("tile_n", "bf16_matmul", "bf16_act"))
def pinn_forward(r, t, params, *, tile_n=2048, bf16_matmul=True, bf16_act=True):
    """p(r, t) -- equivalent to NonlinearFokkerPlanckPINN.forward. Returns (N, 1).

    tile_n:      max batch tile (multiple of 128); sweep 1024..4096.
    bf16_matmul: bf16 MXU operands for layers 1..4 (recommended everywhere).
    bf16_act:    bf16 tanh/activations (recommended on v6e/v7x; False on v5e).
    """
    n = r.shape[0]

    # --- adaptive tile / grid -------------------------------------------------
    n128 = pl.cdiv(n, 128) * 128          # batch rounded up to lane multiple
    tile = min(tile_n, n128)              # don't compute padded work for small N
    if n128 >= 256:
        # Guarantee >= 2 grid steps so v7x's two TensorCores both get work via
        # the "parallel" grid axis (harmless extra step on v5e/v6e).
        half = pl.cdiv(n128 // 128, 2) * 128
        tile = min(tile, half)
    tile = max(tile, 128)
    n_pad = pl.cdiv(n, tile) * tile

    # --- inputs: two contiguous (1, n_pad) rows, no stack/transpose ----------
    r_row = jnp.pad(jnp.asarray(r, jnp.float32).reshape(1, n),
                    ((0, 0), (0, n_pad - n)))
    t_row = jnp.pad(jnp.asarray(t, jnp.float32).reshape(1, n),
                    ((0, 0), (0, n_pad - n)))

    mxu_dtype = jnp.bfloat16 if bf16_matmul else jnp.float32
    act_dtype = jnp.bfloat16 if bf16_act else jnp.float32

    (w0, b0), (w1, b1), (w2, b2), (w3, b3), (w4, b4) = params
    # Only the MXU weights are cast; layer-0 weight and all biases stay f32.
    flat = [w0, b0,
            w1.astype(mxu_dtype), b1,
            w2.astype(mxu_dtype), b2,
            w3.astype(mxu_dtype), b3,
            w4.astype(mxu_dtype), b4]

    def const_spec(a):
        # Constant index_map => Pallas DMAs these weights/biases only once.
        return pl.BlockSpec(a.shape, lambda i: (0, 0))

    row_spec = pl.BlockSpec((1, tile), lambda i: (0, i))
    in_specs = [row_spec, row_spec] + [const_spec(a) for a in flat]

    kernel = functools.partial(_pinn_mlp_kernel, act_dtype=act_dtype)

    out = pl.pallas_call(
        kernel,
        out_shape=jax.ShapeDtypeStruct((OUT_DIM, n_pad), jnp.float32),
        grid_spec=pltpu.PrefetchScalarGridSpec(
            num_scalar_prefetch=0,
            grid=(n_pad // tile,),
            in_specs=in_specs,
            out_specs=pl.BlockSpec((OUT_DIM, tile), lambda i: (0, i)),
        ),
        compiler_params=pltpu.CompilerParams(
            dimension_semantics=("parallel",),
            vmem_limit_bytes=32 * 1024 * 1024),
    )(r_row, t_row, *flat)

    return out[0, :n].reshape(n, 1)


def _reference_forward(r, t, params, compute_dtype=jnp.float32):
    """Pure-jnp reference mirroring the module (and the kernel's precision)."""
    f32 = jnp.float32
    r = r.astype(f32)
    t = t.astype(f32)
    w0, b0 = params[0]
    pre = r[:, None] * w0[:, 0] + t[:, None] * w0[:, 1] + b0[:, 0]    # (N, 64)
    h = jnp.tanh(pre.astype(compute_dtype))
    for (w, b) in params[1:-1]:
        pre = jnp.dot(h.astype(compute_dtype), w.T.astype(compute_dtype),
                      preferred_element_type=f32,
                      precision=jax.lax.Precision.HIGHEST) + b[:, 0]
        h = jnp.tanh(pre.astype(compute_dtype))
    w, b = params[-1]
    y = jnp.dot(h.astype(compute_dtype), w.T.astype(compute_dtype),
                preferred_element_type=f32,
                precision=jax.lax.Precision.HIGHEST) + b[:, 0]
    return _softplus(y)                                               # (N, 1)


if __name__ == "__main__":
    key = jax.random.PRNGKey(0)
    kp, kr, kt = jax.random.split(key, 3)

    params = init_params(kp)

    N = 1000  # collocation points; deliberately NOT a multiple of 128/tile
    r = 2200.0 + 300.0 * jax.random.normal(kr, (N,), jnp.float32)
    t = 365.0 * jax.random.uniform(kt, (N,), jnp.float32)

    ref_f32 = _reference_forward(r, t, params, jnp.float32)

    # --- f32 path: module semantics within f32 matmul rounding ---------------
    p_f32 = jax.block_until_ready(
        pinn_forward(r, t, params, bf16_matmul=False, bf16_act=False))
    assert p_f32.shape == (N, 1)
    assert bool(jnp.allclose(p_f32, ref_f32, atol=1e-3, rtol=1e-3)), \
        "f32 path mismatch vs reference"

    # --- default path (v6e/v7x): bf16 MXU + bf16 tanh ------------------------
    p_bf16 = jax.block_until_ready(pinn_forward(r, t, params))
    ref_bf16 = _reference_forward(r, t, params, jnp.bfloat16)
    rel_matched = (jnp.linalg.norm(p_bf16 - ref_bf16)
                   / (jnp.linalg.norm(ref_bf16) + 1e-12))
    assert float(rel_matched) < 5e-2, "bf16 kernel mismatch vs matched reference"
    rel_vs_f32 = (jnp.linalg.norm(p_bf16 - ref_f32)
                  / (jnp.linalg.norm(ref_f32) + 1e-12))
    assert float(rel_vs_f32) < 0.2, "bf16 kernel too far from f32 semantics"

    # --- v5e-style split: bf16 MXU operands, f32 tanh/activations ------------
    p_v5e = jax.block_until_ready(
        pinn_forward(r, t, params, bf16_matmul=True, bf16_act=False))
    rel_v5e = (jnp.linalg.norm(p_v5e - ref_f32)
               / (jnp.linalg.norm(ref_f32) + 1e-12))
    assert float(rel_v5e) < 0.2, "bf16-MXU/f32-act kernel too far from f32 semantics"

    # TODO(synk): compute_derivatives / fokker_planck_residual / predict use
    # autograd and host-side NumPy/SciPy integration; they are training/analysis
    # utilities, not part of forward, and are not implemented as kernels.
    print("KERNEL_OK")
</pallas_src>

<mosaic_0001>
module attributes {stable_mosaic.version = 11 : i64} {
  func.func @_pinn_mlp_kernel(%arg0: i32, %arg1: memref<1x512xf32, #tpu.memory_space<vmem>>, %arg2: memref<1x512xf32, #tpu.memory_space<vmem>>, %arg3: memref<64x2xf32, #tpu.memory_space<vmem>>, %arg4: memref<64x1xf32, #tpu.memory_space<vmem>>, %arg5: memref<128x64xf32, #tpu.memory_space<vmem>>, %arg6: memref<128x1xf32, #tpu.memory_space<vmem>>, %arg7: memref<128x128xf32, #tpu.memory_space<vmem>>, %arg8: memref<128x1xf32, #tpu.memory_space<vmem>>, %arg9: memref<64x128xf32, #tpu.memory_space<vmem>>, %arg10: memref<64x1xf32, #tpu.memory_space<vmem>>, %arg11: memref<1x64xf32, #tpu.memory_space<vmem>>, %arg12: memref<1x1xf32, #tpu.memory_space<vmem>>, %arg13: memref<1x512xf32, #tpu.memory_space<vmem>>) attributes {dimension_semantics = [#tpu.dimension_semantics<parallel>], iteration_bounds = array<i64: 2>, scalar_prefetch = 0 : i64, scratch_operands = 0 : i64, tpu.core_type = #tpu.core_type<tc>, window_params = [{transform_indices = @transform_0, window_bounds = array<i64: 1, 512>}, {transform_indices = @transform_1, window_bounds = array<i64: 1, 512>}, {pipeline_mode = #tpu.pipeline_mode<synchronous>, transform_indices = @transform_2, window_bounds = array<i64: 64, 2>}, {pipeline_mode = #tpu.pipeline_mode<synchronous>, transform_indices = @transform_3, window_bounds = array<i64: 64, 1>}, {pipeline_mode = #tpu.pipeline_mode<synchronous>, transform_indices = @transform_4, window_bounds = array<i64: 128, 64>}, {pipeline_mode = #tpu.pipeline_mode<synchronous>, transform_indices = @transform_5, window_bounds = array<i64: 128, 1>}, {pipeline_mode = #tpu.pipeline_mode<synchronous>, transform_indices = @transform_6, window_bounds = array<i64: 128, 128>}, {pipeline_mode = #tpu.pipeline_mode<synchronous>, transform_indices = @transform_7, window_bounds = array<i64: 128, 1>}, {pipeline_mode = #tpu.pipeline_mode<synchronous>, transform_indices = @transform_8, window_bounds = array<i64: 64, 128>}, {pipeline_mode = #tpu.pipeline_mode<synchronous>, transform_indices = @transform_9, window_bounds = array<i64: 64, 1>}, {pipeline_mode = #tpu.pipeline_mode<synchronous>, transform_indices = @transform_10, window_bounds = array<i64: 1, 64>}, {pipeline_mode = #tpu.pipeline_mode<synchronous>, transform_indices = @transform_11, window_bounds = array<i64: 1, 1>}, {transform_indices = @transform_12, window_bounds = array<i64: 1, 512>}]} {
    %c0 = arith.constant 0 : index
    %c0_0 = arith.constant 0 : index
    %0 = vector.load %arg1[%c0, %c0_0] : memref<1x512xf32, #tpu.memory_space<vmem>>, vector<1x512xf32>
    %c0_1 = arith.constant 0 : index
    %c0_2 = arith.constant 0 : index
    %1 = vector.load %arg2[%c0_1, %c0_2] : memref<1x512xf32, #tpu.memory_space<vmem>>, vector<1x512xf32>
    %c0_3 = arith.constant 0 : index
    %c0_4 = arith.constant 0 : index
    %2 = vector.load %arg3[%c0_3, %c0_4] : memref<64x2xf32, #tpu.memory_space<vmem>>, vector<64x2xf32>
    %3 = vector.extract_strided_slice %2 {offsets = [0, 0], sizes = [64, 1], strides = [1, 1]} : vector<64x2xf32> to vector<64x1xf32>
    %4 = vector.broadcast %3 : vector<64x1xf32> to vector<64x512xf32>
    %5 = vector.broadcast %0 : vector<1x512xf32> to vector<64x512xf32>
    %6 = arith.mulf %4, %5 : vector<64x512xf32>
    %7 = vector.extract_strided_slice %2 {offsets = [0, 1], sizes = [64, 1], strides = [1, 1]} : vector<64x2xf32> to vector<64x1xf32>
    %8 = vector.broadcast %7 : vector<64x1xf32> to vector<64x512xf32>
    %9 = vector.broadcast %1 : vector<1x512xf32> to vector<64x512xf32>
    %10 = arith.mulf %8, %9 : vector<64x512xf32>
    %11 = arith.addf %6, %10 : vector<64x512xf32>
    %c0_5 = arith.constant 0 : index
    %c0_6 = arith.constant 0 : index
    %12 = vector.load %arg4[%c0_5, %c0_6] : memref<64x1xf32, #tpu.memory_space<vmem>>, vector<64x1xf32>
    %13 = vector.broadcast %12 : vector<64x1xf32> to vector<64x512xf32>
    %14 = arith.addf %11, %13 : vector<64x512xf32>
    %15 = math.tanh %14 : vector<64x512xf32>
    %c0_7 = arith.constant 0 : index
    %c0_8 = arith.constant 0 : index
    %16 = vector.load %arg5[%c0_7, %c0_8] : memref<128x64xf32, #tpu.memory_space<vmem>>, vector<128x64xf32>
    %cst = arith.constant dense<0.000000e+00> : vector<128x512xf32>
    %17 = tpu.matmul %16, %15, %cst {dimension_numbers = #tpu.dot_dimension_numbers<[1], [0], [0], [1], [0, 0, 1, 1], [], []>} : vector<128x64xf32>, vector<64x512xf32>, vector<128x512xf32> -> vector<128x512xf32>
    %c0_9 = arith.constant 0 : index
    %c0_10 = arith.constant 0 : index
    %18 = vector.load %arg6[%c0_9, %c0_10] : memref<128x1xf32, #tpu.memory_space<vmem>>, vector<128x1xf32>
    %19 = vector.broadcast %18 : vector<128x1xf32> to vector<128x512xf32>
    %20 = arith.addf %17, %19 : vector<128x512xf32>
    %21 = math.tanh %20 : vector<128x512xf32>
    %c0_11 = arith.constant 0 : index
    %c0_12 = arith.constant 0 : index
    %22 = vector.load %arg7[%c0_11, %c0_12] : memref<128x128xf32, #tpu.memory_space<vmem>>, vector<128x128xf32>
    %cst_13 = arith.constant dense<0.000000e+00> : vector<128x512xf32>
    %23 = tpu.matmul %22, %21, %cst_13 {dimension_numbers = #tpu.dot_dimension_numbers<[1], [0], [0], [1], [0, 0, 1, 1], [], []>} : vector<128x128xf32>, vector<128x512xf32>, vector<128x512xf32> -> vector<128x512xf32>
    %c0_14 = arith.constant 0 : index
    %c0_15 = arith.constant 0 : index
    %24 = vector.load %arg8[%c0_14, %c0_15] : memref<128x1xf32, #tpu.memory_space<vmem>>, vector<128x1xf32>
    %25 = vector.broadcast %24 : vector<128x1xf32> to vector<128x512xf32>
    %26 = arith.addf %23, %25 : vector<128x512xf32>
    %27 = math.tanh %26 : vector<128x512xf32>
    %c0_16 = arith.constant 0 : index
    %c0_17 = arith.constant 0 : index
    %28 = vector.load %arg9[%c0_16, %c0_17] : memref<64x128xf32, #tpu.memory_space<vmem>>, vector<64x128xf32>
    %cst_18 = arith.constant dense<0.000000e+00> : vector<64x512xf32>
    %29 = tpu.matmul %28, %27, %cst_18 {dimension_numbers = #tpu.dot_dimension_numbers<[1], [0], [0], [1], [0, 0, 1, 1], [], []>} : vector<64x128xf32>, vector<128x512xf32>, vector<64x512xf32> -> vector<64x512xf32>
    %c0_19 = arith.constant 0 : index
    %c0_20 = arith.constant 0 : index
    %30 = vector.load %arg10[%c0_19, %c0_20] : memref<64x1xf32, #tpu.memory_space<vmem>>, vector<64x1xf32>
    %31 = vector.broadcast %30 : vector<64x1xf32> to vector<64x512xf32>
    %32 = arith.addf %29, %31 : vector<64x512xf32>
    %33 = math.tanh %32 : vector<64x512xf32>
    %c0_21 = arith.constant 0 : index
    %c0_22 = arith.constant 0 : index
    %34 = vector.load %arg11[%c0_21, %c0_22] : memref<1x64xf32, #tpu.memory_space<vmem>>, vector<1x64xf32>
    %cst_23 = arith.constant dense<0.000000e+00> : vector<1x512xf32>
    %35 = tpu.matmul %34, %33, %cst_23 {dimension_numbers = #tpu.dot_dimension_numbers<[1], [0], [0], [1], [0, 0, 1, 1], [], []>} : vector<1x64xf32>, vector<64x512xf32>, vector<1x512xf32> -> vector<1x512xf32>
    %c0_24 = arith.constant 0 : index
    %c0_25 = arith.constant 0 : index
    %36 = vector.load %arg12[%c0_24, %c0_25] : memref<1x1xf32, #tpu.memory_space<vmem>>, vector<1x1xf32>
    %37 = vector.broadcast %36 : vector<1x1xf32> to vector<1x512xf32>
    %38 = arith.addf %35, %37 : vector<1x512xf32>
    %cst_26 = arith.constant 2.000000e+01 : f32
    %39 = vector.broadcast %cst_26 : f32 to vector<1x512xf32>
    %40 = arith.cmpf ogt, %38, %39 : vector<1x512xf32>
    %cst_27 = arith.constant 2.000000e+01 : f32
    %41 = vector.broadcast %cst_27 : f32 to vector<1x512xf32>
    %42 = arith.minimumf %38, %41 : vector<1x512xf32>
    %43 = math.exp %42 : vector<1x512xf32>
    %44 = math.log1p %43 : vector<1x512xf32>
    %45 = arith.select %40, %38, %44 : vector<1x512xi1>, vector<1x512xf32>
    %c0_28 = arith.constant 0 : index
    %c0_29 = arith.constant 0 : index
    %46 = vector.load %arg13[%c0_28, %c0_29] : memref<1x512xf32, #tpu.memory_space<vmem>>, vector<1x512xf32>
    tpu.vector_store %arg13[%c0_28, %c0_29], %45 {strides = array<i32>} : memref<1x512xf32, #tpu.memory_space<vmem>>, vector<1x512xf32>,
    return
  }
  func.func @transform_0(%arg0: i32) -> (i32, i32) {
    %c0_i32 = arith.constant 0 : i32
    %c0_i32_0 = arith.constant 0 : i32
    return %c0_i32, %arg0 : i32, i32
  }
  func.func @transform_1(%arg0: i32) -> (i32, i32) {
    %c0_i32 = arith.constant 0 : i32
    %c0_i32_0 = arith.constant 0 : i32
    return %c0_i32, %arg0 : i32, i32
  }
  func.func @transform_2(%arg0: i32) -> (i32, i32) {
    %c0_i32 = arith.constant 0 : i32
    %c0_i32_0 = arith.constant 0 : i32
    %c0_i32_1 = arith.constant 0 : i32
    return %c0_i32, %c0_i32_0 : i32, i32
  }
  func.func @transform_3(%arg0: i32) -> (i32, i32) {
    %c0_i32 = arith.constant 0 : i32
    %c0_i32_0 = arith.constant 0 : i32
    %c0_i32_1 = arith.constant 0 : i32
    return %c0_i32, %c0_i32_0 : i32, i32
  }
  func.func @transform_4(%arg0: i32) -> (i32, i32) {
    %c0_i32 = arith.constant 0 : i32
    %c0_i32_0 = arith.constant 0 : i32
    %c0_i32_1 = arith.constant 0 : i32
    return %c0_i32, %c0_i32_0 : i32, i32
  }
  func.func @transform_5(%arg0: i32) -> (i32, i32) {
    %c0_i32 = arith.constant 0 : i32
    %c0_i32_0 = arith.constant 0 : i32
    %c0_i32_1 = arith.constant 0 : i32
    return %c0_i32, %c0_i32_0 : i32, i32
  }
  func.func @transform_6(%arg0: i32) -> (i32, i32) {
    %c0_i32 = arith.constant 0 : i32
    %c0_i32_0 = arith.constant 0 : i32
    %c0_i32_1 = arith.constant 0 : i32
    return %c0_i32, %c0_i32_0 : i32, i32
  }
  func.func @transform_7(%arg0: i32) -> (i32, i32) {
    %c0_i32 = arith.constant 0 : i32
    %c0_i32_0 = arith.constant 0 : i32
    %c0_i32_1 = arith.constant 0 : i32
    return %c0_i32, %c0_i32_0 : i32, i32
  }
  func.func @transform_8(%arg0: i32) -> (i32, i32) {
    %c0_i32 = arith.constant 0 : i32
    %c0_i32_0 = arith.constant 0 : i32
    %c0_i32_1 = arith.constant 0 : i32
    return %c0_i32, %c0_i32_0 : i32, i32
  }
  func.func @transform_9(%arg0: i32) -> (i32, i32) {
    %c0_i32 = arith.constant 0 : i32
    %c0_i32_0 = arith.constant 0 : i32
    %c0_i32_1 = arith.constant 0 : i32
    return %c0_i32, %c0_i32_0 : i32, i32
  }
  func.func @transform_10(%arg0: i32) -> (i32, i32) {
    %c0_i32 = arith.constant 0 : i32
    %c0_i32_0 = arith.constant 0 : i32
    %c0_i32_1 = arith.constant 0 : i32
    return %c0_i32, %c0_i32_0 : i32, i32
  }
  func.func @transform_11(%arg0: i32) -> (i32, i32) {
    %c0_i32 = arith.constant 0 : i32
    %c0_i32_0 = arith.constant 0 : i32
    %c0_i32_1 = arith.constant 0 : i32
    return %c0_i32, %c0_i32_0 : i32, i32
  }
  func.func @transform_12(%arg0: i32) -> (i32, i32) {
    %c0_i32 = arith.constant 0 : i32
    %c0_i32_0 = arith.constant 0 : i32
    return %c0_i32, %arg0 : i32, i32
  }
}

</mosaic_0001>

<bundles_post_ra>
// kernel: pinn_forward.1
= control target key start
LH: loop header
LB: loop body
LE: loop exit
PB: predicated region body
PF: predicated region fallthrough
CT: control target
= control target key end

     0   :  { %s2973_s23 = smov 0   ;;  %s4163_s0 = inlined_call_operand.vmem [shape: f32[1,1024], index: 0, kind: input, shape index: {}]   ;;  %s4164_s1 = inlined_call_operand.vmem [shape: f32[1,1024], index: 1, kind: input, shape index: {}]   ;;  %s4165_s2 = inlined_call_operand.vmem [shape: f32[64,2], index: 2, kind: input, shape index: {}]   ;;  %s4166_s3 = inlined_call_operand.vmem [shape: f32[64,1], index: 3, kind: input, shape index: {}]   ;;  %s4167_s4 = inlined_call_operand.vmem [shape: f32[128,64], index: 4, kind: input, shape index: {}]   ;;  %s4168_s5 = inlined_call_operand.vmem [shape: f32[128,1], index: 5, kind: input, shape index: {}]   ;;  %s4169_s6 = inlined_call_operand.vmem [shape: f32[128,128], index: 6, kind: input, shape index: {}]   ;;  %s4170_s7 = inlined_call_operand.vmem [shape: f32[128,1], index: 7, kind: input, shape index: {}]   ;;  %s4171_s8 = inlined_call_operand.vmem [shape: f32[64,128], index: 8, kind: input, shape index: {}]   ;;  %s4172_s9 = inlined_call_operand.vmem [shape: f32[64,1], index: 9, kind: input, shape index: {}]   ;;  %s4173_s10 = inlined_call_operand.vmem [shape: f32[1,64], index: 10, kind: input, shape index: {}]   ;;  %s4174_s11 = inlined_call_operand.<no memory space> [shape: f32[1,1], index: 11, kind: input, shape index: {}]   ;;  %s4175_s12 = inlined_call_operand.vmem [shape: f32[1,1024], index: 12, kind: output, shape index: {}]  }
   0x1   :  { %v17_v0 = vstv %s4174_s11 }
   0x2   :  { %18 = vst [vmem:[#allocation2] sm:$0x1] %v17_v0 }
   0x3 LB: > { %s2426_s24 = sadd.s32 4294967295, %s2899_s23   ;;  %p2430_p0 = scmp.ge.s32.totalorder %s2899_s23, 1  ;;  %s2899_s23 = sphi %s2973_s23, %s24_s23  }
   0x4   : > { %p374_p1 = scmp.lt.s32.totalorder %s2899_s23, 3 }
   0x6   : > { %p375_p2 = pnand %p2430_p0, %p374_p1 }
   0x8   : > { %378 = sbr.rel (%p375_p2) target bundleno = 1325 (0x52d), region = 68 }
   0xd   : > { %v442_v1 = vld [vmem:[%s4165_s2 + $0x38] sm:$0xff]  ;;  %v441_v2 = vld [vmem:[%s4165_s2 + $0x30] sm:$0xff]  ;;  %v2901_v3 = vmov 1   ;;  %v2902_v4 = vmov 0   ;;  %v440_v5 = vld [vmem:[%s4165_s2 + $0x28] sm:$0xff]  ;;  %v4177_v33 = vmov 0.0   ;;  %v4176_v60 = vlaneseq }
   0xe   : > { %2482 = vset.pattern.permute.xlu0 %v2901_v3  ;;  %2483 = vset.pattern.permute.xlu1 %v2902_v4  ;;  %v437_v6 = vld [vmem:[%s4165_s2 + $0x10] sm:$0xff]  ;;  %v436_v7 = vld [vmem:[%s4165_s2 + $0x8] sm:$0xff]  ;;  %v660_v8 = vld [vmem:[%s4166_s3 + $0x38] sm:$0xff]  ;;  %s2431_s11 = sshll.u32 %s2426_s24, 2  ;;  %vm877_vm0 = vcmask 523264  }
   0xf   : > { %565 = vperm.xlu0 %2482, %v442_v1   ;;  %475 = vperm.xlu1 %2483, %v441_v2   ;;  %v439_v9 = vld [vmem:[%s4165_s2 + $0x20] sm:$0xff]  ;;  %v659_v10 = vld [vmem:[%s4166_s3 + $0x30] sm:$0xff]  ;;  %v438_v11 = vld [vmem:[%s4165_s2 + $0x18] sm:$0xff]  ;;  %p419_p3 = scmp.lt.s32.totalorder %s2431_s11, 7  ;;  %v3154_v0 = vshrl.u32 %v4176_v60, 7 }
  0x10   : > { %v658_v12 = vld [vmem:[%s4166_s3 + $0x28] sm:$0xff]  ;;  %v435_v13 = vld [vmem:[%s4165_s2] sm:$0xff]  ;;  %v796_v16 = vld [vmem:[%s4168_s5 + $0x78] sm:$0xff]  ;;  %990 = vmatprep.mubr.f32.mxu0 %v4177_v33  ;;  %1151 = vmatprep.mubr.f32.mxu1 %v4177_v33 }
  0x11   : > { %v654_v14 = vld [vmem:[%s4166_s3 + $0x8] sm:$0xff]  ;;  %v657_v15 = vld [vmem:[%s4166_s3 + $0x20] sm:$0xff]  ;;  %v656_v18 = vld [vmem:[%s4166_s3 + $0x18] sm:$0xff]  ;;  %s4244_s11 = smov (!%p419_p3, %s2431_s11), 7  ;;  %4182 = vst [vmem:[#allocation3_spill] sm:$0xff] %v3154_v0 }
  0x12   : > { %v794_v17 = vld [vmem:[%s4168_s5 + $0x68] sm:$0xff]  ;;  %v792_v19 = vld [vmem:[%s4168_s5 + $0x58] sm:$0xff]  ;;  %v655_v21 = vld [vmem:[%s4166_s3 + $0x10] sm:$0xff]  ;;  %s426_s14 = scalar_lea.vmem %s4164_s1, %s4244_s11  ;;  %s421_s17 = scalar_lea.vmem %s4163_s0, %s4244_s11 }
  0x13   : > { %2484 = vset.pattern.permute.xlu1 %v2901_v3  ;;  %557 = vperm.xlu0 %2482, %v440_v5   ;;  %v790_v20 = vld [vmem:[%s4168_s5 + $0x48] sm:$0xff]  ;;  %v788_v22 = vld [vmem:[%s4168_s5 + $0x38] sm:$0xff]  ;;  %v653_v23 = vld [vmem:[%s4166_s3] sm:$0xff]  ;;  %s431_s21 = scalar_lea.vmem %s4175_s12, %s4244_s11 }
  0x14   : > { %561 = vperm.xlu1 %2484, %v441_v2   ;;  %v786_v24 = vld [vmem:[%s4168_s5 + $0x28] sm:$0xff]  ;;  %v795_v25 = vld [vmem:[%s4168_s5 + $0x70] sm:$0xff]  ;;  %v784_v26 = vld [vmem:[%s4168_s5 + $0x18] sm:$0xff] }
  0x15   : > { %v793_v27 = vld [vmem:[%s4168_s5 + $0x60] sm:$0xff]  ;;  %v782_v28 = vld [vmem:[%s4168_s5 + $0x8] sm:$0xff]  ;;  %v791_v29 = vld [vmem:[%s4168_s5 + $0x50] sm:$0xff] }
  0x16   : > { %v1343_v30 = vld [vmem:[%s4170_s7 + $0x78] sm:$0xff]  ;;  %v789_v31 = vld [vmem:[%s4168_s5 + $0x40] sm:$0xff]  ;;  %v1341_v32 = vld [vmem:[%s4170_s7 + $0x68] sm:$0xff] }
  0x17   : > { %545 = vperm.xlu0 %2482, %v437_v6   ;;  %v787_v34 = vld [vmem:[%s4168_s5 + $0x30] sm:$0xff]  ;;  %v1339_v35 = vld [vmem:[%s4170_s7 + $0x58] sm:$0xff]  ;;  %v785_v36 = vld [vmem:[%s4168_s5 + $0x20] sm:$0xff] }
  0x18   : > { %2485 = vset.pattern.permute.xlu1 %v2902_v4  ;;  %v1337_v37 = vld [vmem:[%s4170_s7 + $0x48] sm:$0xff]  ;;  %v783_v38 = vld [vmem:[%s4168_s5 + $0x10] sm:$0xff]  ;;  %v1335_v39 = vld [vmem:[%s4170_s7 + $0x38] sm:$0xff] }
  0x19   : > { %470 = vperm.xlu1 %2485, %v440_v5   ;;  %v781_v40 = vld [vmem:[%s4168_s5] sm:$0xff]  ;;  %v1333_v41 = vld [vmem:[%s4170_s7 + $0x28] sm:$0xff]  ;;  %v1342_v42 = vld [vmem:[%s4170_s7 + $0x70] sm:$0xff]  ;;  %v494_v5 = vsub.s32 2, %v3154_v0 }
  0x1a   : > { %v1331_v43 = vld [vmem:[%s4170_s7 + $0x18] sm:$0xff]  ;;  %v1340_v44 = vld [vmem:[%s4170_s7 + $0x60] sm:$0xff]  ;;  %v1329_v45 = vld [vmem:[%s4170_s7 + $0x8] sm:$0xff] }
  0x1b   : > { %541 = vperm.xlu0 %2482, %v436_v7   ;;  %v1338_v46 = vld [vmem:[%s4170_s7 + $0x50] sm:$0xff]  ;;  %v1825_v47 = vld [vmem:[%s4172_s9 + $0x38] sm:$0xff]  ;;  %v1336_v48 = vld [vmem:[%s4170_s7 + $0x40] sm:$0xff] }
  0x1c   : > { %v1823_v49 = vld [vmem:[%s4172_s9 + $0x28] sm:$0xff]  ;;  %v1334_v50 = vld [vmem:[%s4170_s7 + $0x30] sm:$0xff]  ;;  %v1821_v51 = vld [vmem:[%s4172_s9 + $0x18] sm:$0xff] }
  0x1d   : > { %698 = vperm.xlu1 %2485, %v660_v8   ;;  %v1332_v52 = vld [vmem:[%s4170_s7 + $0x20] sm:$0xff]  ;;  %v1819_v53 = vld [vmem:[%s4172_s9 + $0x8] sm:$0xff]  ;;  %v1330_v54 = vld [vmem:[%s4170_s7 + $0x10] sm:$0xff] }
  0x1e   : > { %v2125_v55 = vld [vmem:[#allocation2] sm:$0x1]  ;;  %v1824_v59 = vld [vmem:[%s4172_s9 + $0x30] sm:$0xff] }
  0x1f   : > { %2490 = vset.pattern.permute.xlu0 %v2902_v4  ;;  %v1328_v56 = vld [vmem:[%s4170_s7] sm:$0xff] }
  0x20   : > { %480 = vperm.xlu0 %2490, %v442_v1   ;;  %v1822_v63 = vld [vmem:[%s4172_s9 + $0x20] sm:$0xff] }
  0x21   : > { %2486 = vset.pattern.permute.xlu1 %v2901_v3  ;;  %v433_v8 = vld [vmem:[%s421_s17] sm:$0xf] }
  0x22   : > { %553 = vperm.xlu1 %2486, %v439_v9  }
  0x24   : > { %465 = vperm.xlu0 %2490, %v439_v9   ;;  %v490_v9 = vsub.s32 1, %v3154_v0 }
  0x26   : > { %2487 = vset.pattern.permute.xlu1 %v2902_v4 }
  0x27   : > { %693 = vperm.xlu1 %2487, %v659_v10  }
  0x28   : > { %460 = vperm.xlu0 %2490, %v438_v11  }
  0x2b   : > { %2488 = vset.pattern.permute.xlu1 %v2901_v3 }
  0x2c   : > { %549 = vperm.xlu1 %2488, %v438_v11   ;;  %688 = vperm.xlu0 %2490, %v658_v12   ;;  %v1818_v11 = vld [vmem:[%s4172_s9] sm:$0xff] }
  0x30   : > { %2489 = vset.pattern.permute.xlu1 %v2902_v4  ;;  %445 = vperm.xlu0 %2490, %v435_v13  }
  0x31   : > { %455 = vperm.xlu1 %2489, %v437_v6   ;;  %v434_v6 = vld [vmem:[%s426_s14] sm:$0xf] }
  0x34   : > { %668 = vperm.xlu0 %2490, %v654_v14   ;;  %v3187_v14 = vrot.slane %v433_v8, %v494_v5 }
  0x35   : > { %683 = vperm.xlu1 %2489, %v657_v15   ;;  %v3189_v15 = vrot.slane %v434_v6, %v494_v5 }
  0x38   : > { %874 = vperm.xlu0 %2490, %v796_v16   ;;  %v498_v16 = vsub.s32 3, %v3154_v0 }
  0x39   : > { %450 = vperm.xlu1 %2489, %v436_v7  }
  0x3c   : > { %864 = vperm.xlu0 %2490, %v794_v17   ;;  %v3192_v17 = vrot.slane %v434_v6, %v490_v9 }
  0x3d   : > { %678 = vperm.xlu1 %2489, %v656_v18  }
  0x40   : > { %854 = vperm.xlu0 %2490, %v792_v19  }
  0x41   : > { %2491 = vset.pattern.permute.xlu1 %v2901_v3  ;;  %v1820_v3 = vld [vmem:[%s4172_s9 + $0x10] sm:$0xff] }
  0x42   : > { %537 = vperm.xlu1 %2491, %v435_v13  }
  0x44   : > { %844 = vperm.xlu0 %2490, %v790_v20   ;;  %v3195_v20 = vrot.slane %v433_v8, %v490_v9 }
  0x46   : > { %2492 = vset.pattern.permute.xlu1 %v2902_v4  ;;  %v3170_v4 = vsub.s32 0, %v3154_v0 }
  0x47   : > { %673 = vperm.xlu1 %2492, %v655_v21  }
  0x48   : > { %834 = vperm.xlu0 %2490, %v788_v22   ;;  %4183 = vst [vmem:[#allocation4_spill] sm:$0xff] %v3170_v4  ;;  %v3182_v12 = vrot.slane %v434_v6, %v3170_v4  ;;  %v3185_v13 = vrot.slane %v433_v8, %v3170_v4 }
  0x4b   : > { %663 = vperm.xlu1 %2492, %v653_v23  }
  0x4c   : > { %824 = vperm.xlu0 %2490, %v786_v24  }
  0x4f   : > { %869 = vperm.xlu1 %2492, %v795_v25  }
  0x50   : > { %814 = vperm.xlu0 %2490, %v784_v26  }
  0x53   : > { %859 = vperm.xlu1 %2492, %v793_v27   ;;  %v3204_v27 = vrot.slane %v434_v6, %v498_v16 }
  0x54   : > { %804 = vperm.xlu0 %2490, %v782_v28  }
  0x57   : > { %849 = vperm.xlu1 %2492, %v791_v29  }
  0x58   : > { %1421 = vperm.xlu0 %2490, %v1343_v30  }
  0x5b   : > { %839 = vperm.xlu1 %2492, %v789_v31   ;;  %v3207_v31 = vrot.slane %v433_v8, %v498_v16 }
  0x5c   : > { %1411 = vperm.xlu0 %2490, %v1341_v32  }
  0x5f   : > { %829 = vperm.xlu1 %2492, %v787_v34  }
  0x60   : > { %1401 = vperm.xlu0 %2490, %v1339_v35  }
  0x63   : > { %819 = vperm.xlu1 %2492, %v785_v36  }
  0x64   : > { %1391 = vperm.xlu0 %2490, %v1337_v37  }
  0x67   : > { %809 = vperm.xlu1 %2492, %v783_v38  }
  0x68   : > { %1381 = vperm.xlu0 %2490, %v1335_v39  }
  0x6b   : > { %799 = vperm.xlu1 %2492, %v781_v40  }
  0x6c   : > { %1371 = vperm.xlu0 %2490, %v1333_v41  }
  0x6f   : > { %1416 = vperm.xlu1 %2492, %v1342_v42  }
  0x70   : > { %1361 = vperm.xlu0 %2490, %v1331_v43  }
  0x73   : > { %1406 = vperm.xlu1 %2492, %v1340_v44  }
  0x74   : > { %1351 = vperm.xlu0 %2490, %v1329_v45  }
  0x77   : > { %1396 = vperm.xlu1 %2492, %v1338_v46  }
  0x78   : > { %1863 = vperm.xlu0 %2490, %v1825_v47  }
  0x7b   : > { %1386 = vperm.xlu1 %2492, %v1336_v48  }
  0x7c   : > { %1853 = vperm.xlu0 %2490, %v1823_v49  }
  0x7f   : > { %1376 = vperm.xlu1 %2492, %v1334_v50  }
  0x80   : > { %1843 = vperm.xlu0 %2490, %v1821_v51  }
  0x83   : > { %1366 = vperm.xlu1 %2492, %v1332_v52  }
  0x84   : > { %1833 = vperm.xlu0 %2490, %v1819_v53  }
  0x87   : > { %1356 = vperm.xlu1 %2492, %v1330_v54  }
  0x88   : > { %2128 = vperm.xlu0 %2490, %v2125_v55  }
  0x8a   : > { %v3141_v57 = vpop.permute.xlu1 %475  ;;  %v566_v58 = vpop.permute.xlu0 %565 }
  0x8b   : > { %1346 = vperm.xlu1 %2492, %v1328_v56   ;;  %v617_v18 = vmul.f32 %v3182_v12, %v566_v58  ;;  %v619_v21 = vmul.f32 %v3189_v15, %v566_v58  ;;  %v618_v25 = vmul.f32 %v3192_v17, %v566_v58  ;;  %v528_v32 = vmul.f32 %v3185_v13, %v3141_v57 }
  0x8c   : > { %v529_v35 = vmul.f32 %v3195_v20, %v3141_v57  ;;  %v530_v36 = vmul.f32 %v3187_v14, %v3141_v57  ;;  %v620_v37 = vmul.f32 %v3204_v27, %v566_v58  ;;  %v531_v49 = vmul.f32 %v3207_v31, %v3141_v57 }
  0x8e   : > { %v3146_v61 = vpop.permute.xlu0 %557 }
  0x8f   : > { %v562_v62 = vpop.permute.xlu1 %561  ;;  %1858 = vperm.xlu1 %2492, %v1824_v59   ;;  %v609_v39 = vmul.f32 %v3182_v12, %v3146_v61  ;;  %v610_v40 = vmul.f32 %v3192_v17, %v3146_v61  ;;  %v611_v53 = vmul.f32 %v3189_v15, %v3146_v61  ;;  %v612_v58 = vmul.f32 %v3204_v27, %v3146_v61 }
  0x90   : > { %v614_v28 = vmul.f32 %v3192_v17, %v562_v62  ;;  %v613_v38 = vmul.f32 %v3182_v12, %v562_v62  ;;  %v615_v50 = vmul.f32 %v3189_v15, %v562_v62  ;;  %v616_v51 = vmul.f32 %v3204_v27, %v562_v62 }
  0x92   : > { %v3156_v1 = vpop.permute.xlu0 %545  ;;  %v646_v47 = vadd.f32 %v614_v28, %v529_v35  ;;  %v645_v55 = vadd.f32 %v613_v38, %v528_v32  ;;  %v647_v9 = vadd.f32 %v615_v50, %v530_v36 }
  0x93   : > { %1848 = vperm.xlu1 %2492, %v1822_v63  }
  0x94   : > { %v471_v2 = vpop.permute.xlu1 %470 }
  0x95   : > { %v524_v41 = vmul.f32 %v3185_v13, %v471_v2  ;;  %v525_v44 = vmul.f32 %v3195_v20, %v471_v2  ;;  %v526_v54 = vmul.f32 %v3187_v14, %v471_v2  ;;  %v527_v59 = vmul.f32 %v3207_v31, %v471_v2 }
  0x96   : > { %v3173_v7 = vpop.permute.xlu0 %541 }
  0x97   : > { %1838 = vperm.xlu1 %2492, %v1820_v3   ;;  %v641_v63 = vadd.f32 %v609_v39, %v524_v41  ;;  %v642_v6 = vadd.f32 %v610_v40, %v525_v44  ;;  %v643_v16 = vadd.f32 %v611_v53, %v526_v54 }
  0x98   : > { %v3176_v10 = vpop.permute.xlu1 %698 }
  0x9b   : > { %v481_v19 = vpop.permute.xlu0 %480  ;;  %1828 = vperm.xlu1 %2492, %v1818_v11   ;;  %v648_v11 = vadd.f32 %v616_v51, %v531_v49 }
  0x9c   : > { %v532_v22 = vmul.f32 %v3185_v13, %v481_v19  ;;  %v534_v23 = vmul.f32 %v3187_v14, %v481_v19  ;;  %v533_v26 = vmul.f32 %v3195_v20, %v481_v19  ;;  %v535_v45 = vmul.f32 %v3207_v31, %v481_v19 }
  0x9d   : > { %v3200_v24 = vpop.permute.xlu1 %553 }
  0x9e   : > { %v649_v29 = vadd.f32 %v617_v18, %v532_v22  ;;  %v651_v34 = vadd.f32 %v619_v21, %v534_v23  ;;  %v650_v43 = vadd.f32 %v618_v25, %v533_v26  ;;  %v652_v8 = vadd.f32 %v620_v37, %v535_v45 }
  0x9f   : > { %v466_v30 = vpop.permute.xlu0 %465  ;;  %v644_v21 = vadd.f32 %v612_v58, %v527_v59  ;;  %v605_v26 = vmul.f32 %v3182_v12, %v3200_v24  ;;  %v607_v35 = vmul.f32 %v3189_v15, %v3200_v24 }
  0xa0   : > { %v729_v46 = vadd.f32 %v3176_v10, %v649_v29  ;;  %v731_v52 = vadd.f32 %v3176_v10, %v651_v34  ;;  %v730_v57 = vadd.f32 %v3176_v10, %v650_v43  ;;  %v520_v61 = vmul.f32 %v3185_v13, %v466_v30 }
  0xa1   : > { %v521_v22 = vmul.f32 %v3195_v20, %v466_v30  ;;  %v522_v23 = vmul.f32 %v3187_v14, %v466_v30  ;;  %v732_v25 = vadd.f32 %v3176_v10, %v652_v8  ;;  %v523_v28 = vmul.f32 %v3207_v31, %v466_v30 }
  0xa2   : > { %v694_v42 = vpop.permute.xlu1 %693  ;;  %2493 = vtanh.f32 %v729_v46  ;;  %v606_v34 = vmul.f32 %v3192_v17, %v3200_v24  ;;  %v608_v10 = vmul.f32 %v3204_v27, %v3200_v24  ;;  %v637_v38 = vadd.f32 %v605_v26, %v520_v61 }
  0xa3   : > { %v3225_v48 = vpop.permute.xlu0 %460  ;;  %v726_v56 = vadd.f32 %v694_v42, %v646_v47  ;;  %v725_v3 = vadd.f32 %v694_v42, %v645_v55  ;;  %2495 = vtanh.f32 %v731_v52  ;;  %v728_v2 = vadd.f32 %v694_v42, %v648_v11 }
  0xa4   : > { %v727_v29 = vadd.f32 %v694_v42, %v647_v9  ;;  %v638_v39 = vadd.f32 %v606_v34, %v521_v22  ;;  %v639_v30 = vadd.f32 %v607_v35, %v522_v23  ;;  %v640_v41 = vadd.f32 %v608_v10, %v523_v28 }
  0xa5   : > { %2497 = vtanh.f32 %v726_v56  ;;  %v593_v24 = vmul.f32 %v3182_v12, %v3173_v7  ;;  %v594_v47 = vmul.f32 %v3192_v17, %v3173_v7  ;;  %v516_v50 = vmul.f32 %v3185_v13, %v3225_v48 }
  0xa6   : > { %2499 = vtanh.f32 %v730_v57  ;;  %v517_v51 = vmul.f32 %v3195_v20, %v3225_v48  ;;  %v518_v52 = vmul.f32 %v3187_v14, %v3225_v48  ;;  %v596_v26 = vmul.f32 %v3204_v27, %v3173_v7 }
  0xa7   : > { %v3239_v62 = vpop.permute.xlu1 %549  ;;  %v689_v5 = vpop.permute.xlu0 %688  ;;  %2501 = vtanh.f32 %v725_v3 }
  0xa8   : > { %v721_v18 = vadd.f32 %v689_v5, %v641_v63  ;;  %v722_v19 = vadd.f32 %v689_v5, %v642_v6  ;;  %v724_v36 = vadd.f32 %v689_v5, %v644_v21  ;;  %v723_v37 = vadd.f32 %v689_v5, %v643_v16 }
  0xa9   : > { %v601_v55 = vmul.f32 %v3182_v12, %v3239_v62  ;;  %v519_v63 = vmul.f32 %v3207_v31, %v3225_v48  ;;  %v602_v57 = vmul.f32 %v3192_v17, %v3239_v62  ;;  %v603_v3 = vmul.f32 %v3189_v15, %v3239_v62 }
  0xaa   : > { %2503 = vtanh.f32 %v722_v19  ;;  %v604_v6 = vmul.f32 %v3204_v27, %v3239_v62  ;;  %v598_v21 = vmul.f32 %v3192_v17, %v3156_v1  ;;  %v595_v62 = vmul.f32 %v3189_v15, %v3173_v7 }
  0xab   : > { %2505 = vtanh.f32 %v721_v18  ;;  %v3256_v45 = vpop.permute.xlu0 %445  ;;  %v597_v18 = vmul.f32 %v3182_v12, %v3156_v1  ;;  %v633_v23 = vadd.f32 %v601_v55, %v516_v50  ;;  %v635_v34 = vadd.f32 %v603_v3, %v518_v52 }
  0xac   : > { %v3248_v32 = vpop.permute.xlu1 %455  ;;  %2507 = vtanh.f32 %v728_v2  ;;  %v506_v3 = vmul.f32 %v3187_v14, %v3256_v45 }
  0xad   : > { %2509 = vtanh.f32 %v732_v25  ;;  %v515_v50 = vmul.f32 %v3207_v31, %v3248_v32 }
  0xae   : > { %2511 = vtanh.f32 %v727_v29  ;;  %v634_v29 = vadd.f32 %v602_v57, %v517_v51 }
  0xaf   : > { %2513 = vtanh.f32 %v724_v36  ;;  %v2494_v49 = vpop.eup %2493  ;;  %v669_v48 = vpop.permute.xlu0 %668  ;;  %v512_v36 = vmul.f32 %v3185_v13, %v3248_v32 }
  0xb0   : > { %v684_v40 = vpop.permute.xlu1 %683  ;;  %2515 = vtanh.f32 %v723_v37  ;;  %v2496_v54 = vpop.eup %2495  ;;  %v636_v37 = vadd.f32 %v604_v6, %v519_v63 }
  0xb1   : > { %v717_v42 = vadd.f32 %v684_v40, %v637_v38  ;;  %v718_v43 = vadd.f32 %v684_v40, %v638_v39  ;;  %v719_v44 = vadd.f32 %v684_v40, %v639_v30  ;;  %v720_v46 = vadd.f32 %v684_v40, %v640_v41 }
  0xb2   : > { %v2498_v59 = vpop.eup %2497  ;;  %v513_v30 = vmul.f32 %v3195_v20, %v3248_v32  ;;  %v514_v40 = vmul.f32 %v3187_v14, %v3248_v32  ;;  %v629_v55 = vadd.f32 %v597_v18, %v512_v36 }
  0xb3   : > { %2517 = vtanh.f32 %v717_v42  ;;  %v2500_v5 = vpop.eup %2499 }
  0xb4   : > { %2519 = vtanh.f32 %v718_v43  ;;  %v451_v53 = vpop.permute.xlu1 %450  ;;  %v2502_v16 = vpop.eup %2501  ;;  %942 = vmatprep.subr.mxu0 %v2500_v5  ;;  %v599_v43 = vmul.f32 %v3189_v15, %v3156_v1 }
  0xb5   : > { %2521 = vtanh.f32 %v719_v44  ;;  %v508_v56 = vmul.f32 %v3185_v13, %v451_v53  ;;  %v509_v58 = vmul.f32 %v3195_v20, %v451_v53  ;;  %v510_v8 = vmul.f32 %v3187_v14, %v451_v53  ;;  %943 = vmatpush1.msra.mxu0 %v2494_v49 }
  0xb6   : > { %2523 = vtanh.f32 %v720_v46  ;;  %v511_v19 = vmul.f32 %v3207_v31, %v451_v53  ;;  %944 = vmatprep.subr.mxu0 %v2498_v59  ;;  %v600_v44 = vmul.f32 %v3204_v27, %v3156_v1  ;;  %v504_v49 = vmul.f32 %v3185_v13, %v3256_v45 }
  0xb7   : > { %v625_v9 = vadd.f32 %v593_v24, %v508_v56  ;;  %v626_v11 = vadd.f32 %v594_v47, %v509_v58  ;;  %v2504_v2 = vpop.eup %2503  ;;  %v627_v10 = vadd.f32 %v595_v62, %v510_v8  ;;  %945 = vmatpush1.msra.mxu0 %v2502_v16  ;;  %v505_v53 = vmul.f32 %v3195_v20, %v3256_v45 }
  0xb8   : > { %v679_v61 = vpop.permute.xlu1 %678  ;;  %v2506_v25 = vpop.eup %2505  ;;  %v628_v7 = vadd.f32 %v596_v26, %v511_v19  ;;  %946 = vmatprep.subr.mxu0 %v2504_v2  ;;  %v630_v59 = vadd.f32 %v598_v21, %v513_v30  ;;  %v631_v13 = vadd.f32 %v599_v43, %v514_v40  ;;  %v632_v8 = vadd.f32 %v600_v44, %v515_v50  ;;  %v769_v43 = vld [vmem:[%s4167_s4 + $0x20] sm:$0xff]  ;;  %v770_v44 = vld [vmem:[%s4167_s4 + $0x28] sm:$0xff]  ;;  %v775_v50 = vld [vmem:[%s4167_s4 + $0x50] sm:$0xff] }
  0xb9   : > { %v705_v22 = vadd.f32 %v669_v48, %v625_v9  ;;  %v706_v28 = vadd.f32 %v669_v48, %v626_v11  ;;  %v2508_v35 = vpop.eup %2507  ;;  %v713_v38 = vadd.f32 %v679_v61, %v633_v23  ;;  %v714_v41 = vadd.f32 %v679_v61, %v634_v29  ;;  %947 = vmatpush1.msra.mxu0 %v2506_v25 }
  0xba   : > { %v2510_v39 = vpop.eup %2509  ;;  %v715_v46 = vadd.f32 %v679_v61, %v635_v34  ;;  %v716_v51 = vadd.f32 %v679_v61, %v636_v37  ;;  %v707_v1 = vadd.f32 %v669_v48, %v627_v10  ;;  %v708_v58 = vadd.f32 %v669_v48, %v628_v7  ;;  %v766_v7 = vld [vmem:[%s4167_s4 + $0x8] sm:$0xff] }
  0xbb   : > { %v2512_v42 = vpop.eup %2511  ;;  %1103 = vmatprep.subr.mxu1 %v2510_v39  ;;  %2525 = vtanh.f32 %v705_v22  ;;  %v765_v39 = vld [vmem:[%s4167_s4] sm:$0xff] }
  0xbc   : > { %v2514_v47 = vpop.eup %2513  ;;  %1104 = vmatpush1.msra.mxu1 %v2496_v54  ;;  %2527 = vtanh.f32 %v706_v28 }
  0xbd   : > { %v538_v24 = vpop.permute.xlu1 %537  ;;  %v2516_v52 = vpop.eup %2515  ;;  %1105 = vmatprep.subr.mxu1 %v2508_v35  ;;  %2529 = vtanh.f32 %v713_v38 }
  0xbe   : > { %1106 = vmatpush1.msra.mxu1 %v2512_v42  ;;  %2531 = vtanh.f32 %v714_v41  ;;  %v589_v32 = vmul.f32 %v3182_v12, %v538_v24  ;;  %v590_v54 = vmul.f32 %v3192_v17, %v538_v24  ;;  %v591_v57 = vmul.f32 %v3189_v15, %v538_v24  ;;  %v767_v41 = vld [vmem:[%s4167_s4 + $0x10] sm:$0xff]  ;;  %v768_v42 = vld [vmem:[%s4167_s4 + $0x18] sm:$0xff] }
  0xbf   : > { %2533 = vtanh.f32 %v715_v46  ;;  %1107 = vmatprep.subr.mxu1 %v2514_v47  ;;  %v592_v5 = vmul.f32 %v3204_v27, %v538_v24  ;;  %v507_v15 = vmul.f32 %v3207_v31, %v3256_v45  ;;  %v771_v46 = vld [vmem:[%s4167_s4 + $0x30] sm:$0xff]  ;;  %v772_v24 = vld [vmem:[%s4167_s4 + $0x38] sm:$0xff]  ;;  %v773_v47 = vld [vmem:[%s4167_s4 + $0x40] sm:$0xff] }
  0xc0   : > { %v2518_v56 = vpop.eup %2517  ;;  %2535 = vtanh.f32 %v716_v51  ;;  %1108 = vmatpush1.msra.mxu1 %v2516_v52  ;;  %v621_v14 = vadd.f32 %v589_v32, %v504_v49  ;;  %v622_v18 = vadd.f32 %v590_v54, %v505_v53  ;;  %v623_v27 = vadd.f32 %v591_v57, %v506_v3  ;;  %v774_v49 = vld [vmem:[%s4167_s4 + $0x48] sm:$0xff]  ;;  %v776_v51 = vld [vmem:[%s4167_s4 + $0x58] sm:$0xff]  ;;  %v777_v52 = vld [vmem:[%s4167_s4 + $0x60] sm:$0xff] }
  0xc1   : > { %v2520_v63 = vpop.eup %2519  ;;  %2537 = vtanh.f32 %v707_v1  ;;  %v624_v19 = vadd.f32 %v592_v5, %v507_v15  ;;  %v778_v53 = vld [vmem:[%s4167_s4 + $0x68] sm:$0xff]  ;;  %v779_v1 = vld [vmem:[%s4167_s4 + $0x70] sm:$0xff] }
  0xc2   : > { %v2522_v20 = vpop.eup %2521  ;;  %948 = vmatprep.subr.mxu0 %v2520_v63  ;;  %v674_v6 = vpop.permute.xlu1 %673  ;;  %2539 = vtanh.f32 %v708_v58 }
  0xc3   : > { %v2524_v9 = vpop.eup %2523  ;;  %v709_v11 = vadd.f32 %v674_v6, %v629_v55  ;;  %v710_v16 = vadd.f32 %v674_v6, %v630_v59  ;;  %v711_v12 = vadd.f32 %v674_v6, %v631_v13  ;;  %949 = vmatpush1.msra.mxu0 %v2518_v56  ;;  %v712_v17 = vadd.f32 %v674_v6, %v632_v8  ;;  %v780_v55 = vld [vmem:[%s4167_s4 + $0x78] sm:$0xff]  ;;  %v3428_v58 = vpop.permute.xlu0 %874 }
  0xc4   : > { %1109 = vmatprep.subr.mxu1 %v2524_v9 }
  0xc5   : > { %2541 = vtanh.f32 %v709_v11  ;;  %1110 = vmatpush1.msra.mxu1 %v2522_v20 }
  0xc6   : > { %2543 = vtanh.f32 %v710_v16  ;;  %v664_v48 = vpop.permute.xlu1 %663 }
  0xc7   : > { %2545 = vtanh.f32 %v711_v12  ;;  %v701_v61 = vadd.f32 %v664_v48, %v621_v14  ;;  %v702_v2 = vadd.f32 %v664_v48, %v622_v18  ;;  %v703_v21 = vadd.f32 %v664_v48, %v623_v27  ;;  %v3432_v13 = vpop.permute.xlu0 %864 }
  0xc8   : > { %2547 = vtanh.f32 %v712_v17  ;;  %v704_v62 = vadd.f32 %v664_v48, %v624_v19  ;;  %v2526_v22 = vpop.eup %2525 }
  0xc9   : > { %2549 = vtanh.f32 %v701_v61  ;;  %v2528_v31 = vpop.eup %2527 }
  0xca   : > { %2551 = vtanh.f32 %v702_v2  ;;  %v2530_v45 = vpop.eup %2529  ;;  %v3426_v56 = vpop.permute.xlu1 %869 }
  0xcb   : > { %2553 = vtanh.f32 %v703_v21  ;;  %v2532_v23 = vpop.eup %2531  ;;  %v3436_v54 = vpop.permute.xlu0 %854 }
  0xcc   : > { %2555 = vtanh.f32 %v704_v62  ;;  %v2534_v25 = vpop.eup %2533  ;;  %950 = vmatprep.subr.mxu0 %v2532_v23 }
  0xcd   : > { %v2536_v26 = vpop.eup %2535  ;;  %951 = vmatpush1.msra.mxu0 %v2530_v45 }
  0xce   : > { %v2538_v28 = vpop.eup %2537  ;;  %1111 = vmatprep.subr.mxu1 %v2536_v26  ;;  %v3430_v59 = vpop.permute.xlu1 %859 }
  0xcf   : > { %v2540_v29 = vpop.eup %2539  ;;  %1112 = vmatpush1.msra.mxu1 %v2534_v25  ;;  %v3446_v11 = vpop.permute.xlu0 %844 }
  0xd2   : > { %v2542_v34 = vpop.eup %2541  ;;  %v3434_v63 = vpop.permute.xlu1 %849 }
  0xd3   : > { %v2544_v35 = vpop.eup %2543  ;;  %v3456_v48 = vpop.permute.xlu0 %834 }
  0xd4   : > { %v2546_v36 = vpop.eup %2545  ;;  %952 = vmatprep.subr.mxu0 %v2544_v35 }
  0xd5   : > { %v2548_v10 = vpop.eup %2547  ;;  %953 = vmatpush1.msra.mxu0 %v2542_v34 }
  0xd6   : > { %v2550_v37 = vpop.eup %2549  ;;  %1113 = vmatprep.subr.mxu1 %v2548_v10  ;;  %954 = vmatprep.subr.mxu0 %v2528_v31  ;;  %v3442_v6 = vpop.permute.xlu1 %839 }
  0xd7   : > { %v2552_v38 = vpop.eup %2551  ;;  %1114 = vmatpush1.msra.mxu1 %v2546_v36  ;;  %955 = vmatpush1.msra.mxu0 %v2526_v22  ;;  %v3466_v45 = vpop.permute.xlu0 %824 }
  0xd8   : > { %v2554_v30 = vpop.eup %2553  ;;  %1115 = vmatprep.subr.mxu1 %v2540_v29  ;;  %956 = vmatprep.subr.mxu0 %v2552_v38 }
  0xd9   : > { %v2556_v40 = vpop.eup %2555  ;;  %1116 = vmatpush1.msra.mxu1 %v2538_v28  ;;  %957 = vmatpush1.msra.mxu0 %v2550_v37 }
  0xda   : > { %1117 = vmatprep.subr.mxu1 %v2556_v40  ;;  %2434 = vmatmul.mubr.msk.f32.vlgmr.msra.gmra.mxu0 %vm877_vm0, %v765_v39  ;;  %v3452_v14 = vpop.permute.xlu1 %829 }
  0xdb   : > { %1118 = vmatpush1.msra.mxu1 %v2554_v30  ;;  %996 = vmatprep.mubr.f32.mxu0 %v4177_v33  ;;  %v3476_v36 = vpop.permute.xlu0 %814 }
  0xdc   : > { %2450 = vmatmul.mubr.msk.f32.vlgmr.msra.gmra.mxu1 %vm877_vm0, %v765_v39 }
  0xdd   : > { %1157 = vmatprep.mubr.f32.mxu1 %v4177_v33 }
  0xde   : > { %2435 = vmatmul.mubr.msk.f32.gmra.mxu0 %vm877_vm0, %v766_v7  ;;  %v3462_v62 = vpop.permute.xlu1 %819 }
  0xdf   : > { %1002 = vmatprep.mubr.f32.mxu0 %v4177_v33 }
  0xe0   : > { %2451 = vmatmul.mubr.msk.f32.gmra.mxu1 %vm877_vm0, %v766_v7 }
  0xe1   : > { %1163 = vmatprep.mubr.f32.mxu1 %v4177_v33 }
  0xe2   : > { %2436 = vmatmul.mubr.msk.f32.gmra.mxu0 %vm877_vm0, %v767_v41  ;;  %v3472_v29 = vpop.permute.xlu1 %809 }
  0xe3   : > { %1008 = vmatprep.mubr.f32.mxu0 %v4177_v33 }
  0xe4   : > { %2452 = vmatmul.mubr.msk.f32.gmra.mxu1 %vm877_vm0, %v767_v41  ;;  %v3486_v41 = vpop.permute.xlu0 %804 }
  0xe5   : > { %1169 = vmatprep.mubr.f32.mxu1 %v4177_v33 }
  0xe6   : > { %2437 = vmatmul.mubr.msk.f32.gmra.mxu0 %vm877_vm0, %v768_v42  ;;  %v3482_v30 = vpop.permute.xlu1 %799 }
  0xe7   : > { %1014 = vmatprep.mubr.f32.mxu0 %v4177_v33 }
  0xe8   : > { %2453 = vmatmul.mubr.msk.f32.gmra.mxu1 %vm877_vm0, %v768_v42 }
  0xe9   : > { %1175 = vmatprep.mubr.f32.mxu1 %v4177_v33 }
  0xea   : > { %2438 = vmatmul.mubr.msk.f32.gmra.mxu0 %vm877_vm0, %v769_v43 }
  0xeb   : > { %1020 = vmatprep.mubr.f32.mxu0 %v4177_v33 }
  0xec   : > { %2454 = vmatmul.mubr.msk.f32.gmra.mxu1 %vm877_vm0, %v769_v43 }
  0xed   : > { %1181 = vmatprep.mubr.f32.mxu1 %v4177_v33 }
  0xee   : > { %2439 = vmatmul.mubr.msk.f32.gmra.mxu0 %vm877_vm0, %v770_v44 }
  0xef   : > { %1026 = vmatprep.mubr.f32.mxu0 %v4177_v33 }
  0xf0   : > { %2455 = vmatmul.mubr.msk.f32.gmra.mxu1 %vm877_vm0, %v770_v44 }
  0xf1   : > { %1187 = vmatprep.mubr.f32.mxu1 %v4177_v33 }
  0xf2   : > { %2440 = vmatmul.mubr.msk.f32.gmra.mxu0 %vm877_vm0, %v771_v46 }
  0xf3   : > { %1032 = vmatprep.mubr.f32.mxu0 %v4177_v33 }
  0xf4   : > { %2456 = vmatmul.mubr.msk.f32.gmra.mxu1 %vm877_vm0, %v771_v46 }
  0xf5   : > { %1193 = vmatprep.mubr.f32.mxu1 %v4177_v33 }
  0xf6   : > { %2441 = vmatmul.mubr.msk.f32.gmra.mxu0 %vm877_vm0, %v772_v24 }
  0xf7   : > { %1038 = vmatprep.mubr.f32.mxu0 %v4177_v33 }
  0xf8   : > { %2457 = vmatmul.mubr.msk.f32.gmra.mxu1 %vm877_vm0, %v772_v24 }
  0xf9   : > { %1199 = vmatprep.mubr.f32.mxu1 %v4177_v33 }
  0xfa   : > { %2442 = vmatmul.mubr.msk.f32.gmra.mxu0 %vm877_vm0, %v773_v47 }
  0xfb   : > { %1044 = vmatprep.mubr.f32.mxu0 %v4177_v33 }
  0xfc   : > { %2458 = vmatmul.mubr.msk.f32.gmra.mxu1 %vm877_vm0, %v773_v47 }
  0xfd   : > { %1205 = vmatprep.mubr.f32.mxu1 %v4177_v33 }
  0xfe   : > { %2443 = vmatmul.mubr.msk.f32.gmra.mxu0 %vm877_vm0, %v774_v49 }
  0xff   : > { %1050 = vmatprep.mubr.f32.mxu0 %v4177_v33 }
 0x100   : > { %2459 = vmatmul.mubr.msk.f32.gmra.mxu1 %vm877_vm0, %v774_v49 }
 0x101   : > { %1211 = vmatprep.mubr.f32.mxu1 %v4177_v33 }
 0x102   : > { %2444 = vmatmul.mubr.msk.f32.gmra.mxu0 %vm877_vm0, %v775_v50 }
 0x103   : > { %1056 = vmatprep.mubr.f32.mxu0 %v4177_v33 }
 0x104   : > { %2460 = vmatmul.mubr.msk.f32.gmra.mxu1 %vm877_vm0, %v775_v50 }
 0x105   : > { %1217 = vmatprep.mubr.f32.mxu1 %v4177_v33 }
 0x106   : > { %2445 = vmatmul.mubr.msk.f32.gmra.mxu0 %vm877_vm0, %v776_v51 }
 0x107   : > { %1062 = vmatprep.mubr.f32.mxu0 %v4177_v33 }
 0x108   : > { %2461 = vmatmul.mubr.msk.f32.gmra.mxu1 %vm877_vm0, %v776_v51 }
 0x109   : > { %1223 = vmatprep.mubr.f32.mxu1 %v4177_v33 }
 0x10a   : > { %2446 = vmatmul.mubr.msk.f32.gmra.mxu0 %vm877_vm0, %v777_v52 }
 0x10b   : > { %1068 = vmatprep.mubr.f32.mxu0 %v4177_v33 }
 0x10c   : > { %2462 = vmatmul.mubr.msk.f32.gmra.mxu1 %vm877_vm0, %v777_v52 }
 0x10d   : > { %1229 = vmatprep.mubr.f32.mxu1 %v4177_v33 }
 0x10e   : > { %2447 = vmatmul.mubr.msk.f32.gmra.mxu0 %vm877_vm0, %v778_v53 }
 0x10f   : > { %1074 = vmatprep.mubr.f32.mxu0 %v4177_v33 }
 0x110   : > { %2463 = vmatmul.mubr.msk.f32.gmra.mxu1 %vm877_vm0, %v778_v53 }
 0x111   : > { %1235 = vmatprep.mubr.f32.mxu1 %v4177_v33 }
 0x112   : > { %2448 = vmatmul.mubr.msk.f32.gmra.mxu0 %vm877_vm0, %v779_v1 }
 0x113   : > { %1080 = vmatprep.mubr.f32.mxu0 %v4177_v33 }
 0x114   : > { %2464 = vmatmul.mubr.msk.f32.gmra.mxu1 %vm877_vm0, %v779_v1 }
 0x115   : > { %1241 = vmatprep.mubr.f32.mxu1 %v4177_v33 }
 0x116   : > { %2449 = vmatmul.mubr.msk.f32.gmra.mxu0 %vm877_vm0, %v780_v55 }
 0x117   : > { %1488 = vmatprep.mubr.f32.mxu0 %v4177_v33 }
 0x118   : > { %2465 = vmatmul.mubr.msk.f32.gmra.mxu1 %vm877_vm0, %v780_v55 }
 0x119   : > { %1649 = vmatprep.mubr.f32.mxu1 %v4177_v33 }
 0x19a   : > { %v992_v32 = vpop.f32.mrf.mxu0 }
 0x19b   : > { %v993_v42 = vadd.f32 %v992_v32, %v3482_v30 }
 0x19c   : > { %v3438_v57 = vpop.f32.mrf.mxu1  ;;  %v994_v20 = vpop.f32.mrf.mxu0 }
 0x19d   : > { %v995_v43 = vadd.f32 %v994_v20, %v3482_v30  ;;  %2557 = vtanh.f32 %v993_v42 }
 0x19e   : > { %v3440_v3 = vpop.f32.mrf.mxu1  ;;  %v998_v5 = vpop.f32.mrf.mxu0 }
 0x19f   : > { %v999_v24 = vadd.f32 %v998_v5, %v3486_v41  ;;  %2559 = vtanh.f32 %v995_v43 }
 0x1a0   : > { %v3444_v8 = vpop.f32.mrf.mxu1  ;;  %v1000_v9 = vpop.f32.mrf.mxu0 }
 0x1a1   : > { %v1001_v47 = vadd.f32 %v1000_v9, %v3486_v41  ;;  %2561 = vtanh.f32 %v999_v24 }
 0x1a2   : > { %v3448_v16 = vpop.f32.mrf.mxu1  ;;  %v1004_v12 = vpop.f32.mrf.mxu0 }
 0x1a3   : > { %v1005_v51 = vadd.f32 %v1004_v12, %v3472_v29  ;;  %2563 = vtanh.f32 %v1001_v47 }
 0x1a4   : > { %v3450_v15 = vpop.f32.mrf.mxu1  ;;  %v1006_v17 = vpop.f32.mrf.mxu0 }
 0x1a5   : > { %v1007_v52 = vadd.f32 %v1006_v17, %v3472_v29  ;;  %2565 = vtanh.f32 %v1005_v51 }
 0x1a6   : > { %v3454_v18 = vpop.f32.mrf.mxu1  ;;  %v1010_v27 = vpop.f32.mrf.mxu0 }
 0x1a7   : > { %v1011_v55 = vadd.f32 %v1010_v27, %v3476_v36  ;;  %2567 = vtanh.f32 %v1007_v52 }
 0x1a8   : > { %v3458_v19 = vpop.f32.mrf.mxu1  ;;  %v1012_v61 = vpop.f32.mrf.mxu0 }
 0x1a9   : > { %v1013_v32 = vadd.f32 %v1012_v61, %v3476_v36  ;;  %2569 = vtanh.f32 %v1011_v55 }
 0x1aa   : > { %v3460_v2 = vpop.f32.mrf.mxu1  ;;  %v1016_v21 = vpop.f32.mrf.mxu0 }
 0x1ab   : > { %v1017_v9 = vadd.f32 %v1016_v21, %v3462_v62  ;;  %2571 = vtanh.f32 %v1013_v32 }
 0x1ac   : > { %v3464_v22 = vpop.f32.mrf.mxu1  ;;  %v1018_v31 = vpop.f32.mrf.mxu0 }
 0x1ad   : > { %v1019_v12 = vadd.f32 %v1018_v31, %v3462_v62  ;;  %2573 = vtanh.f32 %v1017_v9  ;;  %v3521_v9 = vpop.eup %2557 }
 0x1ae   : > { %v3468_v23 = vpop.f32.mrf.mxu1  ;;  %v1022_v25 = vpop.f32.mrf.mxu0  ;;  %4184 = vst [vmem:[#allocation5_spill] sm:$0xff] %v3521_v9 }
 0x1af   : > { %v1023_v43 = vadd.f32 %v1022_v25, %v3466_v45  ;;  %2575 = vtanh.f32 %v1019_v12 }
 0x1b0   : > { %v3470_v26 = vpop.f32.mrf.mxu1  ;;  %v1024_v28 = vpop.f32.mrf.mxu0 }
 0x1b1   : > { %v1025_v27 = vadd.f32 %v1024_v28, %v3466_v45  ;;  %2577 = vtanh.f32 %v1023_v43  ;;  %v3526_v43 = vpop.eup %2559 }
 0x1b2   : > { %v3474_v34 = vpop.f32.mrf.mxu1  ;;  %v1028_v35 = vpop.f32.mrf.mxu0  ;;  %4185 = vst [vmem:[#allocation6_spill] sm:$0xff] %v3526_v43 }
 0x1b3   : > { %v1029_v47 = vadd.f32 %v1028_v35, %v3452_v14  ;;  %2579 = vtanh.f32 %v1025_v27 }
 0x1b4   : > { %v3478_v10 = vpop.f32.mrf.mxu1  ;;  %v1030_v37 = vpop.f32.mrf.mxu0 }
 0x1b5   : > { %v1031_v21 = vadd.f32 %v1030_v37, %v3452_v14  ;;  %2581 = vtanh.f32 %v1029_v47 }
 0x1b6   : > { %v3480_v38 = vpop.f32.mrf.mxu1  ;;  %v1034_v39 = vpop.f32.mrf.mxu0 }
 0x1b7   : > { %v1035_v52 = vadd.f32 %v1034_v39, %v3456_v48  ;;  %2583 = vtanh.f32 %v1031_v21 }
 0x1b8   : > { %v3484_v40 = vpop.f32.mrf.mxu1  ;;  %v1036_v7 = vpop.f32.mrf.mxu0 }
 0x1b9   : > { %v1037_v25 = vadd.f32 %v1036_v7, %v3456_v48  ;;  %2585 = vtanh.f32 %v1035_v52  ;;  %v3529_v7 = vpop.eup %2561 }
 0x1ba   : > { %v3490_v44 = vpop.f32.mrf.mxu1  ;;  %v1040_v46 = vpop.f32.mrf.mxu0  ;;  %4186 = vst [vmem:[#allocation7_spill] sm:$0xff] %v3529_v7 }
 0x1bb   : > { %v1041_v32 = vadd.f32 %v1040_v46, %v3442_v6  ;;  %2587 = vtanh.f32 %v1037_v25  ;;  %v3534_v60 = vpop.eup %2563 }
 0x1bc   : > { %v3494_v49 = vpop.f32.mrf.mxu1  ;;  %v1042_v50 = vpop.f32.mrf.mxu0  ;;  %4187 = vst [vmem:[#allocation8_spill] sm:$0xff] %v3534_v60 }
 0x1bd   : > { %v1043_v35 = vadd.f32 %v1042_v50, %v3442_v6  ;;  %2589 = vtanh.f32 %v1041_v32  ;;  %v3537_v21 = vpop.eup %2565 }
 0x1be   : > { %v3498_v53 = vpop.f32.mrf.mxu1  ;;  %v1046_v1 = vpop.f32.mrf.mxu0  ;;  %4188 = vst [vmem:[#allocation9_spill] sm:$0xff] %v3537_v21 }
 0x1bf   : > { %v1047_v39 = vadd.f32 %v1046_v1, %v3446_v11  ;;  %2591 = vtanh.f32 %v1043_v35  ;;  %v3540_v0 = vpop.eup %2567 }
 0x1c0   : > { %v3502_v20 = vpop.f32.mrf.mxu1  ;;  %v1048_v5 = vpop.f32.mrf.mxu0  ;;  %4189 = vst [vmem:[#allocation10_spill] sm:$0xff] %v3540_v0 }
 0x1c1   : > { %v1049_v27 = vadd.f32 %v1048_v5, %v3446_v11  ;;  %2593 = vtanh.f32 %v1047_v39  ;;  %v3543_v25 = vpop.eup %2569 }
 0x1c2   : > { %v3506_v42 = vpop.f32.mrf.mxu1  ;;  %v1052_v17 = vpop.f32.mrf.mxu0  ;;  %4190 = vst [vmem:[#allocation11_spill] sm:$0xff] %v3543_v25 }
 0x1c3   : > { %v1053_v50 = vadd.f32 %v1052_v17, %v3434_v63  ;;  %2595 = vtanh.f32 %v1049_v27  ;;  %v3546_v17 = vpop.eup %2571 }
 0x1c4   : > { %v3510_v24 = vpop.f32.mrf.mxu1  ;;  %v1054_v61 = vpop.f32.mrf.mxu0  ;;  %4191 = vst [vmem:[#allocation12_spill] sm:$0xff] %v3546_v17 }
 0x1c5   : > { %v1055_v52 = vadd.f32 %v1054_v61, %v3434_v63  ;;  %2597 = vtanh.f32 %v1053_v50  ;;  %v3549_v61 = vpop.eup %2573 }
 0x1c6   : > { %v3514_v51 = vpop.f32.mrf.mxu1  ;;  %v1058_v31 = vpop.f32.mrf.mxu0  ;;  %4192 = vst [vmem:[#allocation13_spill] sm:$0xff] %v3549_v61 }
 0x1c7   : > { %v1059_v5 = vadd.f32 %v1058_v31, %v3436_v54  ;;  %2599 = vtanh.f32 %v1055_v52  ;;  %v3552_v31 = vpop.eup %2575 }
 0x1c8   : > { %v3518_v55 = vpop.f32.mrf.mxu1  ;;  %v1060_v28 = vpop.f32.mrf.mxu0  ;;  %4193 = vst [vmem:[#allocation14_spill] sm:$0xff] %v3552_v31 }
 0x1c9   : > { %v1061_v4 = vadd.f32 %v1060_v28, %v3436_v54  ;;  %2601 = vtanh.f32 %v1059_v5  ;;  %v3555_v28 = vpop.eup %2577 }
 0x1ca   : > { %v3524_v37 = vpop.f32.mrf.mxu1  ;;  %v1064_v12 = vpop.f32.mrf.mxu0  ;;  %4194 = vst [vmem:[#allocation15_spill] sm:$0xff] %v3555_v28 }
 0x1cb   : > { %v1065_v35 = vadd.f32 %v1064_v12, %v3430_v59  ;;  %2603 = vtanh.f32 %v1061_v4  ;;  %v3558_v12 = vpop.eup %2579 }
 0x1cc   : > { %v3532_v47 = vpop.f32.mrf.mxu1  ;;  %v1066_v46 = vpop.f32.mrf.mxu0  ;;  %4195 = vst [vmem:[#allocation16_spill] sm:$0xff] %v3558_v12 }
 0x1cd   : > { %v1067_v43 = vadd.f32 %v1066_v46, %v3430_v59  ;;  %2605 = vtanh.f32 %v1065_v35  ;;  %v3561_v46 = vpop.eup %2581 }
 0x1ce   : > { %v1227_v33 = vpop.f32.mrf.mxu1  ;;  %v1070_v1 = vpop.f32.mrf.mxu0  ;;  %4196 = vst [vmem:[#allocation17_spill] sm:$0xff] %v3561_v46 }
 0x1cf   : > { %v1071_v27 = vadd.f32 %v1070_v1, %v3432_v13  ;;  %2607 = vtanh.f32 %v1067_v43  ;;  %v3564_v1 = vpop.eup %2583 }
 0x1d0   : > { %v1231_v32 = vpop.f32.mrf.mxu1  ;;  %v1072_v9 = vpop.f32.mrf.mxu0 }
 0x1d1   : > { %v1073_v60 = vadd.f32 %v1072_v9, %v3432_v13  ;;  %2609 = vtanh.f32 %v1071_v27  ;;  %v3567_v9 = vpop.eup %2585 }
 0x1d2   : > { %v1233_v39 = vpop.f32.mrf.mxu1  ;;  %v1076_v7 = vpop.f32.mrf.mxu0 }
 0x1d3   : > { %v1077_v52 = vadd.f32 %v1076_v7, %v3426_v56  ;;  %2611 = vtanh.f32 %v1073_v60  ;;  %v3569_v35 = vpop.eup %2587 }
 0x1d4   : > { %v1237_v50 = vpop.f32.mrf.mxu1  ;;  %v1078_v21 = vpop.f32.mrf.mxu0 }
 0x1d5   : > { %v1079_v0 = vadd.f32 %v1078_v21, %v3426_v56  ;;  %2613 = vtanh.f32 %v1077_v52  ;;  %v3572_v43 = vpop.eup %2589  ;;  %v1238_v12 = vadd.f32 %v1237_v50, %v3426_v56 }
 0x1d6   : > { %v1239_v5 = vpop.f32.mrf.mxu1  ;;  %v1082_v25 = vpop.f32.mrf.mxu0 }
 0x1d7   : > { %v1083_v4 = vadd.f32 %v1082_v25, %v3428_v58  ;;  %2615 = vtanh.f32 %v1079_v0  ;;  %v3575_v28 = vpop.eup %2591  ;;  %v1240_v25 = vadd.f32 %v1239_v5, %v3426_v56  ;;  %v1228_v5 = vadd.f32 %v1227_v33, %v3430_v59 }
 0x1d8   : > { %v1243_v17 = vpop.f32.mrf.mxu1  ;;  %v1084_v61 = vpop.f32.mrf.mxu0  ;;  %v1226_v56 = vadd.f32 %v3532_v47, %v3430_v59  ;;  %v1216_v33 = vadd.f32 %v3514_v51, %v3434_v63  ;;  %v1214_v59 = vadd.f32 %v3510_v24, %v3434_v63  ;;  %v1204_v51 = vadd.f32 %v3498_v53, %v3442_v6 }
 0x1d9   : > { %v1085_v7 = vadd.f32 %v1084_v61, %v3428_v58  ;;  %v1244_v21 = vadd.f32 %v1243_v17, %v3428_v58  ;;  %2617 = vtanh.f32 %v1083_v4  ;;  %v3579_v27 = vpop.eup %2593  ;;  %v1234_v61 = vadd.f32 %v1233_v39, %v3432_v13 }
 0x1da   : > { %v1245_v31 = vpop.f32.mrf.mxu1  ;;  %v3582_v52 = vpop.eup %2595  ;;  %v1232_v17 = vadd.f32 %v1231_v32, %v3432_v13  ;;  %v1222_v39 = vadd.f32 %v3524_v37, %v3436_v54  ;;  %v1220_v13 = vadd.f32 %v3518_v55, %v3436_v54  ;;  %v1210_v37 = vadd.f32 %v3506_v42, %v3446_v11 }
 0x1db   : > { %v1246_v60 = vadd.f32 %v1245_v31, %v3428_v58  ;;  %2619 = vtanh.f32 %v1085_v7  ;;  %v3585_v0 = vpop.eup %2597  ;;  %v1208_v54 = vadd.f32 %v3502_v20, %v3446_v11  ;;  %v1202_v63 = vadd.f32 %v3494_v49, %v3442_v6 }
 0x1dc   : > { %v3588_v46 = vpop.eup %2599  ;;  %v1198_v42 = vadd.f32 %v3490_v44, %v3456_v48  ;;  %v1196_v11 = vadd.f32 %v3484_v40, %v3456_v48  ;;  %v1192_v53 = vadd.f32 %v3480_v38, %v3452_v14  ;;  %v1190_v49 = vadd.f32 %v3478_v10, %v3452_v14 }
 0x1dd   : > { %2621 = vtanh.f32 %v1246_v60  ;;  %v3591_v58 = vpop.eup %2601  ;;  %v1186_v48 = vadd.f32 %v3474_v34, %v3466_v45  ;;  %v1184_v38 = vadd.f32 %v3470_v26, %v3466_v45  ;;  %v1180_v14 = vadd.f32 %v3468_v23, %v3462_v62 }
 0x1de   : > { %2623 = vtanh.f32 %v1244_v21  ;;  %v3595_v31 = vpop.eup %2603  ;;  %v1178_v34 = vadd.f32 %v3464_v22, %v3462_v62  ;;  %v1174_v45 = vadd.f32 %v3460_v2, %v3476_v36  ;;  %v1172_v23 = vadd.f32 %v3458_v19, %v3476_v36 }
 0x1df   : > { %2625 = vtanh.f32 %v1240_v25  ;;  %v2606_v50 = vpop.eup %2605  ;;  %v1168_v62 = vadd.f32 %v3454_v18, %v3472_v29  ;;  %v1166_v22 = vadd.f32 %v3450_v15, %v3472_v29  ;;  %v1162_v36 = vadd.f32 %v3448_v16, %v3486_v41 }
 0x1e0   : > { %2627 = vtanh.f32 %v1238_v12  ;;  %v2608_v32 = vpop.eup %2607  ;;  %v1156_v29 = vadd.f32 %v3440_v3, %v3482_v30 }
 0x1e1   : > { %2629 = vtanh.f32 %v1234_v61  ;;  %v2610_v4 = vpop.eup %2609 }
 0x1e2   : > { %2631 = vtanh.f32 %v1232_v17  ;;  %v2612_v47 = vpop.eup %2611  ;;  %v1160_v17 = vadd.f32 %v3444_v8, %v3486_v41 }
 0x1e3   : > { %2633 = vtanh.f32 %v1228_v5  ;;  %v2614_v12 = vpop.eup %2613 }
 0x1e4   : > { %2635 = vtanh.f32 %v1226_v56  ;;  %v2616_v55 = vpop.eup %2615  ;;  %v4202_v56 = vld [vmem:[#allocation12_spill] sm:$0xff] }
 0x1e5   : > { %2637 = vtanh.f32 %v1222_v39  ;;  %v4203_v39 = vld [vmem:[#allocation11_spill] sm:$0xff] }
 0x1e6   : > { %2639 = vtanh.f32 %v1220_v13  ;;  %v2618_v7 = vpop.eup %2617  ;;  %v4204_v13 = vld [vmem:[#allocation10_spill] sm:$0xff] }
 0x1e7   : > { %2641 = vtanh.f32 %v1216_v33  ;;  %v4205_v33 = vld [vmem:[#allocation9_spill] sm:$0xff] }
 0x1e8   : > { %2643 = vtanh.f32 %v1214_v59  ;;  %v2620_v24 = vpop.eup %2619  ;;  %v4206_v59 = vld [vmem:[#allocation8_spill] sm:$0xff] }
 0x1e9   : > { %2645 = vtanh.f32 %v1210_v37  ;;  %1424 = vmatprep.subr.mxu0 %v2620_v24  ;;  %v4207_v37 = vld [vmem:[#allocation7_spill] sm:$0xff] }
 0x1ea   : > { %v2622_v21 = vpop.eup %2621  ;;  %2647 = vtanh.f32 %v1208_v54  ;;  %1425 = vmatpush1.msra.mxu0 %v2618_v7  ;;  %v4209_v7 = vld [vmem:[#allocation5_spill] sm:$0xff]  ;;  %v1313_v24 = vld [vmem:[%s4169_s6 + $0x8] sm:$0xff] }
 0x1eb   : > { %v2624_v20 = vpop.eup %2623  ;;  %2649 = vtanh.f32 %v1204_v51  ;;  %1585 = vmatprep.subr.mxu1 %v2622_v21  ;;  %1426 = vmatprep.subr.mxu0 %v2616_v55  ;;  %v4208_v55 = vld [vmem:[#allocation6_spill] sm:$0xff] }
 0x1ec   : > { %v2626_v6 = vpop.eup %2625  ;;  %2651 = vtanh.f32 %v1202_v63  ;;  %1586 = vmatpush1.msra.mxu1 %v2624_v20  ;;  %1427 = vmatpush1.msra.mxu0 %v2614_v12  ;;  %v1312_v12 = vld [vmem:[%s4169_s6] sm:$0xff]  ;;  %v4210_v63 = vmov 0.0   ;;  %v1315_v21 = vld [vmem:[%s4169_s6 + $0x18] sm:$0xff]  ;;  %v1317_v20 = vld [vmem:[%s4169_s6 + $0x28] sm:$0xff] }
 0x1ed   : > { %v2628_v44 = vpop.eup %2627  ;;  %2653 = vtanh.f32 %v1198_v42  ;;  %1587 = vmatprep.subr.mxu1 %v2626_v6  ;;  %1428 = vmatprep.subr.mxu0 %v2612_v47  ;;  %v1314_v42 = vld [vmem:[%s4169_s6 + $0x10] sm:$0xff]  ;;  %v1319_v6 = vld [vmem:[%s4169_s6 + $0x38] sm:$0xff] }
 0x1ee   : > { %v2630_v40 = vpop.eup %2629  ;;  %2655 = vtanh.f32 %v1196_v11  ;;  %1588 = vmatpush1.msra.mxu1 %v2628_v44  ;;  %1429 = vmatpush1.msra.mxu0 %v2610_v4  ;;  %v1316_v11 = vld [vmem:[%s4169_s6 + $0x20] sm:$0xff]  ;;  %v1321_v44 = vld [vmem:[%s4169_s6 + $0x48] sm:$0xff] }
 0x1ef   : > { %v2632_v25 = vpop.eup %2631  ;;  %2657 = vtanh.f32 %v1192_v53  ;;  %1589 = vmatprep.subr.mxu1 %v2630_v40  ;;  %1430 = vmatprep.subr.mxu0 %v2608_v32  ;;  %v1318_v53 = vld [vmem:[%s4169_s6 + $0x30] sm:$0xff]  ;;  %v1323_v40 = vld [vmem:[%s4169_s6 + $0x58] sm:$0xff] }
 0x1f0   : > { %v2634_v10 = vpop.eup %2633  ;;  %2659 = vtanh.f32 %v1190_v49  ;;  %1590 = vmatpush1.msra.mxu1 %v2632_v25  ;;  %1431 = vmatpush1.msra.mxu0 %v2606_v50  ;;  %v1320_v49 = vld [vmem:[%s4169_s6 + $0x40] sm:$0xff]  ;;  %v1325_v25 = vld [vmem:[%s4169_s6 + $0x68] sm:$0xff] }
 0x1f1   : > { %v2636_v60 = vpop.eup %2635  ;;  %2661 = vtanh.f32 %v1186_v48  ;;  %1591 = vmatprep.subr.mxu1 %v2634_v10  ;;  %1432 = vmatprep.subr.mxu0 %v3595_v31  ;;  %v1322_v48 = vld [vmem:[%s4169_s6 + $0x50] sm:$0xff]  ;;  %v1327_v10 = vld [vmem:[%s4169_s6 + $0x78] sm:$0xff] }
 0x1f2   : > { %v2638_v26 = vpop.eup %2637  ;;  %2663 = vtanh.f32 %v1184_v38  ;;  %1592 = vmatpush1.msra.mxu1 %v2636_v60  ;;  %1433 = vmatpush1.msra.mxu0 %v3591_v58  ;;  %v4201_v58 = vld [vmem:[#allocation13_spill] sm:$0xff]  ;;  %v1324_v38 = vld [vmem:[%s4169_s6 + $0x60] sm:$0xff]  ;;  %v3751_v60 = vpop.permute.xlu0 %1421 }
 0x1f3   : > { %v2640_v61 = vpop.eup %2639  ;;  %2665 = vtanh.f32 %v1180_v14  ;;  %1593 = vmatprep.subr.mxu1 %v2638_v26  ;;  %1434 = vmatprep.subr.mxu0 %v3588_v46  ;;  %v1154_v46 = vadd.f32 %v3438_v57, %v3482_v30  ;;  %v1326_v14 = vld [vmem:[%s4169_s6 + $0x70] sm:$0xff] }
 0x1f4   : > { %v2642_v2 = vpop.eup %2641  ;;  %2667 = vtanh.f32 %v1178_v34  ;;  %1594 = vmatpush1.msra.mxu1 %v2640_v61  ;;  %1435 = vmatpush1.msra.mxu0 %v3585_v0  ;;  %v3749_v34 = vpop.permute.xlu1 %1416 }
 0x1f5   : > { %v2644_v19 = vpop.eup %2643  ;;  %2669 = vtanh.f32 %v1174_v45  ;;  %1595 = vmatprep.subr.mxu1 %v2642_v2  ;;  %1436 = vmatprep.subr.mxu0 %v3582_v52 }
 0x1f6   : > { %v2646_v18 = vpop.eup %2645  ;;  %2671 = vtanh.f32 %v1172_v23  ;;  %1596 = vmatpush1.msra.mxu1 %v2644_v19  ;;  %1437 = vmatpush1.msra.mxu0 %v3579_v27  ;;  %v4198_v27 = vld [vmem:[#allocation16_spill] sm:$0xff]  ;;  %v3755_v26 = vpop.permute.xlu0 %1411 }
 0x1f7   : > { %v2648_v15 = vpop.eup %2647  ;;  %2673 = vtanh.f32 %v1168_v62  ;;  %1597 = vmatprep.subr.mxu1 %v2646_v18  ;;  %1438 = vmatprep.subr.mxu0 %v3575_v28  ;;  %v4197_v28 = vld [vmem:[#allocation17_spill] sm:$0xff] }
 0x1f8   : > { %v2650_v16 = vpop.eup %2649  ;;  %2675 = vtanh.f32 %v1166_v22  ;;  %1598 = vmatpush1.msra.mxu1 %v2648_v15  ;;  %1439 = vmatpush1.msra.mxu0 %v3572_v43  ;;  %v3753_v45 = vpop.permute.xlu1 %1406 }
 0x1f9   : > { %v2652_v8 = vpop.eup %2651  ;;  %2677 = vtanh.f32 %v1162_v36  ;;  %1599 = vmatprep.subr.mxu1 %v2650_v16  ;;  %1440 = vmatprep.subr.mxu0 %v3569_v35  ;;  %v4199_v35 = vld [vmem:[#allocation15_spill] sm:$0xff] }
 0x1fa   : > { %v2654_v41 = vpop.eup %2653  ;;  %2679 = vtanh.f32 %v1160_v17  ;;  %1600 = vmatpush1.msra.mxu1 %v2652_v8  ;;  %1441 = vmatpush1.msra.mxu0 %v3567_v9  ;;  %v4200_v9 = vld [vmem:[#allocation14_spill] sm:$0xff]  ;;  %v3759_v62 = vpop.permute.xlu0 %1401 }
 0x1fb   : > { %v2656_v3 = vpop.eup %2655  ;;  %2681 = vtanh.f32 %v1156_v29  ;;  %1601 = vmatprep.subr.mxu1 %v2654_v41  ;;  %1442 = vmatprep.subr.mxu0 %v3564_v1 }
 0x1fc   : > { %v2658_v57 = vpop.eup %2657  ;;  %2683 = vtanh.f32 %v1154_v46  ;;  %1602 = vmatpush1.msra.mxu1 %v2656_v3  ;;  %1443 = vmatpush1.msra.mxu0 %v4197_v28  ;;  %v3757_v23 = vpop.permute.xlu1 %1396 }
 0x1fd   : > { %v2660_v30 = vpop.eup %2659  ;;  %1603 = vmatprep.subr.mxu1 %v2658_v57  ;;  %1444 = vmatprep.subr.mxu0 %v4198_v27 }
 0x1fe   : > { %v2662_v43 = vpop.eup %2661  ;;  %1604 = vmatpush1.msra.mxu1 %v2660_v30  ;;  %1445 = vmatpush1.msra.mxu0 %v4199_v35  ;;  %v3769_v29 = vpop.permute.xlu0 %1391 }
 0x1ff   : > { %v2664_v52 = vpop.eup %2663  ;;  %1605 = vmatprep.subr.mxu1 %v2662_v43  ;;  %1446 = vmatprep.subr.mxu0 %v4200_v9 }
 0x200   : > { %v2666_v0 = vpop.eup %2665  ;;  %1606 = vmatpush1.msra.mxu1 %v2664_v52  ;;  %1447 = vmatpush1.msra.mxu0 %v4201_v58  ;;  %v3765_v18 = vpop.permute.xlu1 %1386 }
 0x201   : > { %v2668_v5 = vpop.eup %2667  ;;  %1607 = vmatprep.subr.mxu1 %v2666_v0  ;;  %1448 = vmatprep.subr.mxu0 %v4202_v56 }
 0x202   : > { %v2670_v1 = vpop.eup %2669  ;;  %1608 = vmatpush1.msra.mxu1 %v2668_v5  ;;  %1449 = vmatpush1.msra.mxu0 %v4203_v39  ;;  %v3779_v28 = vpop.permute.xlu0 %1381 }
 0x203   : > { %v2672_v31 = vpop.eup %2671  ;;  %1609 = vmatprep.subr.mxu1 %v2670_v1  ;;  %1450 = vmatprep.subr.mxu0 %v4204_v13 }
 0x204   : > { %v2674_v50 = vpop.eup %2673  ;;  %1610 = vmatpush1.msra.mxu1 %v2672_v31  ;;  %1451 = vmatpush1.msra.mxu0 %v4205_v33  ;;  %v3775_v3 = vpop.permute.xlu1 %1376 }
 0x205   : > { %v2676_v32 = vpop.eup %2675  ;;  %1611 = vmatprep.subr.mxu1 %v2674_v50  ;;  %1452 = vmatprep.subr.mxu0 %v4206_v59 }
 0x206   : > { %v2678_v4 = vpop.eup %2677  ;;  %1612 = vmatpush1.msra.mxu1 %v2676_v32  ;;  %1453 = vmatpush1.msra.mxu0 %v4207_v37  ;;  %v3789_v58 = vpop.permute.xlu0 %1371 }
 0x207   : > { %v2680_v47 = vpop.eup %2679  ;;  %1613 = vmatprep.subr.mxu1 %v2678_v4  ;;  %1454 = vmatprep.subr.mxu0 %v4208_v55 }
 0x208   : > { %v2682_v54 = vpop.eup %2681  ;;  %1614 = vmatpush1.msra.mxu1 %v2680_v47  ;;  %1455 = vmatpush1.msra.mxu0 %v4209_v7  ;;  %v3785_v0 = vpop.permute.xlu1 %1366 }
 0x209   : > { %v2684_v51 = vpop.eup %2683  ;;  %1615 = vmatprep.subr.mxu1 %v2682_v54  ;;  %1489 = vmatmul.mubr.f32.vlgmr.msra.gmra.mxu0 %v1312_v12 }
 0x20a   : > { %1616 = vmatpush1.msra.mxu1 %v2684_v51  ;;  %1494 = vmatprep.mubr.f32.mxu0 %v4210_v63  ;;  %v3799_v33 = vpop.permute.xlu0 %1361 }
 0x20b   : > { %1650 = vmatmul.mubr.f32.vlgmr.msra.gmra.mxu1 %v1312_v12 }
 0x20c   : > { %1655 = vmatprep.mubr.f32.mxu1 %v4210_v63  ;;  %v3795_v50 = vpop.permute.xlu1 %1356 }
 0x20d   : > { %1495 = vmatmul.mubr.f32.gmra.mxu0 %v1313_v24 }
 0x20e   : > { %1500 = vmatprep.mubr.f32.mxu0 %v4210_v63  ;;  %v3810_v7 = vpop.permute.xlu0 %1351 }
 0x20f   : > { %1656 = vmatmul.mubr.f32.gmra.mxu1 %v1313_v24 }
 0x210   : > { %1661 = vmatprep.mubr.f32.mxu1 %v4210_v63  ;;  %v3805_v12 = vpop.permute.xlu1 %1346 }
 0x211   : > { %1501 = vmatmul.mubr.f32.gmra.mxu0 %v1314_v42 }
 0x212   : > { %1506 = vmatprep.mubr.f32.mxu0 %v4210_v63 }
 0x213   : > { %1662 = vmatmul.mubr.f32.gmra.mxu1 %v1314_v42 }
 0x214   : > { %1667 = vmatprep.mubr.f32.mxu1 %v4210_v63 }
 0x215   : > { %1507 = vmatmul.mubr.f32.gmra.mxu0 %v1315_v21 }
 0x216   : > { %1512 = vmatprep.mubr.f32.mxu0 %v4210_v63 }
 0x217   : > { %1668 = vmatmul.mubr.f32.gmra.mxu1 %v1315_v21 }
 0x218   : > { %1673 = vmatprep.mubr.f32.mxu1 %v4210_v63 }
 0x219   : > { %1513 = vmatmul.mubr.f32.gmra.mxu0 %v1316_v11 }
 0x21a   : > { %1518 = vmatprep.mubr.f32.mxu0 %v4210_v63 }
 0x21b   : > { %1674 = vmatmul.mubr.f32.gmra.mxu1 %v1316_v11 }
 0x21c   : > { %1679 = vmatprep.mubr.f32.mxu1 %v4210_v63 }
 0x21d   : > { %1519 = vmatmul.mubr.f32.gmra.mxu0 %v1317_v20 }
 0x21e   : > { %1524 = vmatprep.mubr.f32.mxu0 %v4210_v63 }
 0x21f   : > { %1680 = vmatmul.mubr.f32.gmra.mxu1 %v1317_v20 }
 0x220   : > { %1685 = vmatprep.mubr.f32.mxu1 %v4210_v63 }
 0x221   : > { %1525 = vmatmul.mubr.f32.gmra.mxu0 %v1318_v53 }
 0x222   : > { %1530 = vmatprep.mubr.f32.mxu0 %v4210_v63 }
 0x223   : > { %1686 = vmatmul.mubr.f32.gmra.mxu1 %v1318_v53 }
 0x224   : > { %1691 = vmatprep.mubr.f32.mxu1 %v4210_v63 }
 0x225   : > { %1531 = vmatmul.mubr.f32.gmra.mxu0 %v1319_v6 }
 0x226   : > { %1536 = vmatprep.mubr.f32.mxu0 %v4210_v63 }
 0x227   : > { %1692 = vmatmul.mubr.f32.gmra.mxu1 %v1319_v6 }
 0x228   : > { %1697 = vmatprep.mubr.f32.mxu1 %v4210_v63 }
 0x229   : > { %1537 = vmatmul.mubr.f32.gmra.mxu0 %v1320_v49 }
 0x22a   : > { %1542 = vmatprep.mubr.f32.mxu0 %v4210_v63 }
 0x22b   : > { %1698 = vmatmul.mubr.f32.gmra.mxu1 %v1320_v49 }
 0x22c   : > { %1703 = vmatprep.mubr.f32.mxu1 %v4210_v63 }
 0x22d   : > { %1543 = vmatmul.mubr.f32.gmra.mxu0 %v1321_v44 }
 0x22e   : > { %1548 = vmatprep.mubr.f32.mxu0 %v4210_v63 }
 0x22f   : > { %1704 = vmatmul.mubr.f32.gmra.mxu1 %v1321_v44 }
 0x230   : > { %1709 = vmatprep.mubr.f32.mxu1 %v4210_v63 }
 0x231   : > { %1549 = vmatmul.mubr.f32.gmra.mxu0 %v1322_v48 }
 0x232   : > { %1554 = vmatprep.mubr.f32.mxu0 %v4210_v63 }
 0x233   : > { %1710 = vmatmul.mubr.f32.gmra.mxu1 %v1322_v48 }
 0x234   : > { %1715 = vmatprep.mubr.f32.mxu1 %v4210_v63 }
 0x235   : > { %1555 = vmatmul.mubr.f32.gmra.mxu0 %v1323_v40 }
 0x236   : > { %1560 = vmatprep.mubr.f32.mxu0 %v4210_v63 }
 0x237   : > { %1716 = vmatmul.mubr.f32.gmra.mxu1 %v1323_v40 }
 0x238   : > { %1721 = vmatprep.mubr.f32.mxu1 %v4210_v63 }
 0x239   : > { %1561 = vmatmul.mubr.f32.gmra.mxu0 %v1324_v38 }
 0x23a   : > { %1566 = vmatprep.mubr.f32.mxu0 %v4210_v63 }
 0x23b   : > { %1722 = vmatmul.mubr.f32.gmra.mxu1 %v1324_v38 }
 0x23c   : > { %1727 = vmatprep.mubr.f32.mxu1 %v4210_v63 }
 0x23d   : > { %1567 = vmatmul.mubr.f32.gmra.mxu0 %v1325_v25 }
 0x23e   : > { %1572 = vmatprep.mubr.f32.mxu0 %v4210_v63 }
 0x23f   : > { %1728 = vmatmul.mubr.f32.gmra.mxu1 %v1325_v25 }
 0x240   : > { %1733 = vmatprep.mubr.f32.mxu1 %v4210_v63 }
 0x241   : > { %1573 = vmatmul.mubr.f32.gmra.mxu0 %v1326_v14 }
 0x242   : > { %1578 = vmatprep.mubr.f32.mxu0 %v4210_v63 }
 0x243   : > { %1734 = vmatmul.mubr.f32.gmra.mxu1 %v1326_v14 }
 0x244   : > { %1739 = vmatprep.mubr.f32.mxu1 %v4210_v63 }
 0x245   : > { %1579 = vmatmul.mubr.f32.gmra.mxu0 %v1327_v10 }
 0x246   : > { %1930 = vmatprep.mubr.f32.mxu0 %v4210_v63 }
 0x247   : > { %1740 = vmatmul.mubr.f32.gmra.mxu1 %v1327_v10 }
 0x248   : > { %2043 = vmatprep.mubr.f32.mxu1 %v4210_v63 }
 0x2c9   : > { %v1490_v61 = vpop.f32.mrf.mxu0 }
 0x2ca   : > { %v1491_v55 = vadd.f32 %v1490_v61, %v3805_v12 }
 0x2cb   : > { %v3761_v2 = vpop.f32.mrf.mxu1  ;;  %v1492_v22 = vpop.f32.mrf.mxu0 }
 0x2cc   : > { %v1493_v24 = vadd.f32 %v1492_v22, %v3805_v12  ;;  %2685 = vtanh.f32 %v1491_v55 }
 0x2cd   : > { %v3763_v19 = vpop.f32.mrf.mxu1  ;;  %v1496_v36 = vpop.f32.mrf.mxu0 }
 0x2ce   : > { %v1497_v21 = vadd.f32 %v1496_v36, %v3810_v7  ;;  %2687 = vtanh.f32 %v1493_v24 }
 0x2cf   : > { %v3767_v17 = vpop.f32.mrf.mxu1  ;;  %v1498_v15 = vpop.f32.mrf.mxu0 }
 0x2d0   : > { %v1499_v20 = vadd.f32 %v1498_v15, %v3810_v7  ;;  %2689 = vtanh.f32 %v1497_v21 }
 0x2d1   : > { %v3771_v16 = vpop.f32.mrf.mxu1  ;;  %v1502_v46 = vpop.f32.mrf.mxu0 }
 0x2d2   : > { %v1503_v6 = vadd.f32 %v1502_v46, %v3795_v50  ;;  %2691 = vtanh.f32 %v1499_v20 }
 0x2d3   : > { %v3773_v8 = vpop.f32.mrf.mxu1  ;;  %v1504_v41 = vpop.f32.mrf.mxu0 }
 0x2d4   : > { %v1505_v44 = vadd.f32 %v1504_v41, %v3795_v50  ;;  %2693 = vtanh.f32 %v1503_v6 }
 0x2d5   : > { %v3777_v57 = vpop.f32.mrf.mxu1  ;;  %v1508_v30 = vpop.f32.mrf.mxu0 }
 0x2d6   : > { %v1509_v40 = vadd.f32 %v1508_v30, %v3799_v33  ;;  %2695 = vtanh.f32 %v1505_v44 }
 0x2d7   : > { %v3781_v43 = vpop.f32.mrf.mxu1  ;;  %v1510_v27 = vpop.f32.mrf.mxu0 }
 0x2d8   : > { %v1511_v25 = vadd.f32 %v1510_v27, %v3799_v33  ;;  %2697 = vtanh.f32 %v1509_v40 }
 0x2d9   : > { %v3783_v52 = vpop.f32.mrf.mxu1  ;;  %v1514_v35 = vpop.f32.mrf.mxu0 }
 0x2da   : > { %v1515_v10 = vadd.f32 %v1514_v35, %v3785_v0  ;;  %2699 = vtanh.f32 %v1511_v25 }
 0x2db   : > { %v3787_v9 = vpop.f32.mrf.mxu1  ;;  %v1516_v5 = vpop.f32.mrf.mxu0 }
 0x2dc   : > { %v1517_v22 = vadd.f32 %v1516_v5, %v3785_v0  ;;  %2701 = vtanh.f32 %v1515_v10 }
 0x2dd   : > { %v3791_v1 = vpop.f32.mrf.mxu1  ;;  %v1520_v56 = vpop.f32.mrf.mxu0 }
 0x2de   : > { %v1521_v15 = vadd.f32 %v1520_v56, %v3789_v58  ;;  %2703 = vtanh.f32 %v1517_v22 }
 0x2df   : > { %v3793_v31 = vpop.f32.mrf.mxu1  ;;  %v1522_v39 = vpop.f32.mrf.mxu0 }
 0x2e0   : > { %v1523_v41 = vadd.f32 %v1522_v39, %v3789_v58  ;;  %2705 = vtanh.f32 %v1521_v15 }
 0x2e1   : > { %v3797_v13 = vpop.f32.mrf.mxu1  ;;  %v1526_v32 = vpop.f32.mrf.mxu0 }
 0x2e2   : > { %v1527_v27 = vadd.f32 %v1526_v32, %v3775_v3  ;;  %2707 = vtanh.f32 %v1523_v41  ;;  %v3844_v32 = vpop.eup %2685 }
 0x2e3   : > { %v3801_v4 = vpop.f32.mrf.mxu1  ;;  %v1528_v59 = vpop.f32.mrf.mxu0  ;;  %4211 = vst [vmem:[#allocation17_spill] sm:$0xff] %v3844_v32 }
 0x2e4   : > { %v1529_v35 = vadd.f32 %v1528_v59, %v3775_v3  ;;  %2709 = vtanh.f32 %v1527_v27  ;;  %v3849_v40 = vpop.eup %2687 }
 0x2e5   : > { %v3803_v47 = vpop.f32.mrf.mxu1  ;;  %v1532_v37 = vpop.f32.mrf.mxu0  ;;  %4212 = vst [vmem:[#allocation16_spill] sm:$0xff] %v3849_v40 }
 0x2e6   : > { %v1533_v5 = vadd.f32 %v1532_v37, %v3779_v28  ;;  %2711 = vtanh.f32 %v1529_v35 }
 0x2e7   : > { %v3807_v54 = vpop.f32.mrf.mxu1  ;;  %v1534_v51 = vpop.f32.mrf.mxu0 }
 0x2e8   : > { %v1535_v56 = vadd.f32 %v1534_v51, %v3779_v28  ;;  %2713 = vtanh.f32 %v1533_v5  ;;  %v3852_v51 = vpop.eup %2689 }
 0x2e9   : > { %v3813_v42 = vpop.f32.mrf.mxu1  ;;  %v1538_v11 = vpop.f32.mrf.mxu0  ;;  %4213 = vst [vmem:[#allocation15_spill] sm:$0xff] %v3852_v51 }
 0x2ea   : > { %v1539_v39 = vadd.f32 %v1538_v11, %v3765_v18  ;;  %2715 = vtanh.f32 %v1535_v56  ;;  %v3857_v22 = vpop.eup %2691 }
 0x2eb   : > { %v3817_v53 = vpop.f32.mrf.mxu1  ;;  %v1540_v49 = vpop.f32.mrf.mxu0  ;;  %4214 = vst [vmem:[#allocation14_spill] sm:$0xff] %v3857_v22 }
 0x2ec   : > { %v1541_v59 = vadd.f32 %v1540_v49, %v3765_v18  ;;  %2717 = vtanh.f32 %v1539_v39  ;;  %v3860_v41 = vpop.eup %2693 }
 0x2ed   : > { %v3821_v48 = vpop.f32.mrf.mxu1  ;;  %v1544_v38 = vpop.f32.mrf.mxu0  ;;  %4215 = vst [vmem:[#allocation13_spill] sm:$0xff] %v3860_v41 }
 0x2ee   : > { %v1545_v37 = vadd.f32 %v1544_v38, %v3769_v29  ;;  %2719 = vtanh.f32 %v1541_v59  ;;  %v3863_v35 = vpop.eup %2695 }
 0x2ef   : > { %v3825_v14 = vpop.f32.mrf.mxu1  ;;  %v1546_v61 = vpop.f32.mrf.mxu0  ;;  %4216 = vst [vmem:[#allocation12_spill] sm:$0xff] %v3863_v35 }
 0x2f0   : > { %v1547_v10 = vadd.f32 %v1546_v61, %v3769_v29  ;;  %2721 = vtanh.f32 %v1545_v37  ;;  %v3866_v56 = vpop.eup %2697 }
 0x2f1   : > { %v3829_v36 = vpop.f32.mrf.mxu1  ;;  %v1550_v46 = vpop.f32.mrf.mxu0  ;;  %4217 = vst [vmem:[#allocation11_spill] sm:$0xff] %v3866_v56 }
 0x2f2   : > { %v1551_v49 = vadd.f32 %v1550_v46, %v3757_v23  ;;  %2723 = vtanh.f32 %v1547_v10  ;;  %v3869_v46 = vpop.eup %2699 }
 0x2f3   : > { %v3833_v30 = vpop.f32.mrf.mxu1  ;;  %v1552_v55 = vpop.f32.mrf.mxu0  ;;  %4218 = vst [vmem:[#allocation10_spill] sm:$0xff] %v3869_v46 }
 0x2f4   : > { %v1553_v27 = vadd.f32 %v1552_v55, %v3757_v23  ;;  %2725 = vtanh.f32 %v1551_v49  ;;  %v3872_v55 = vpop.eup %2701 }
 0x2f5   : > { %v3837_v24 = vpop.f32.mrf.mxu1  ;;  %v1556_v21 = vpop.f32.mrf.mxu0  ;;  %4219 = vst [vmem:[#allocation9_spill] sm:$0xff] %v3872_v55 }
 0x2f6   : > { %v1557_v5 = vadd.f32 %v1556_v21, %v3759_v62  ;;  %2727 = vtanh.f32 %v1553_v27  ;;  %v3875_v21 = vpop.eup %2703 }
 0x2f7   : > { %v3841_v20 = vpop.f32.mrf.mxu1  ;;  %v1558_v6 = vpop.f32.mrf.mxu0  ;;  %4220 = vst [vmem:[#allocation8_spill] sm:$0xff] %v3875_v21 }
 0x2f8   : > { %v1559_v39 = vadd.f32 %v1558_v6, %v3759_v62  ;;  %2729 = vtanh.f32 %v1557_v5  ;;  %v3878_v6 = vpop.eup %2705 }
 0x2f9   : > { %v3847_v44 = vpop.f32.mrf.mxu1  ;;  %v1562_v25 = vpop.f32.mrf.mxu0  ;;  %4221 = vst [vmem:[#allocation7_spill] sm:$0xff] %v3878_v6 }
 0x2fa   : > { %v1563_v59 = vadd.f32 %v1562_v25, %v3753_v45  ;;  %2731 = vtanh.f32 %v1559_v39  ;;  %v3881_v25 = vpop.eup %2707 }
 0x2fb   : > { %v3855_v11 = vpop.f32.mrf.mxu1  ;;  %v1564_v15 = vpop.f32.mrf.mxu0  ;;  %4222 = vst [vmem:[#allocation6_spill] sm:$0xff] %v3881_v25 }
 0x2fc   : > { %v1565_v37 = vadd.f32 %v1564_v15, %v3753_v45  ;;  %2733 = vtanh.f32 %v1563_v59  ;;  %v3884_v15 = vpop.eup %2709 }
 0x2fd   : > { %v1725_v38 = vpop.f32.mrf.mxu1  ;;  %v1568_v61 = vpop.f32.mrf.mxu0  ;;  %4223 = vst [vmem:[#allocation5_spill] sm:$0xff] %v3884_v15 }
 0x2fe   : > { %v1569_v10 = vadd.f32 %v1568_v61, %v3755_v26  ;;  %2735 = vtanh.f32 %v1565_v37  ;;  %v3887_v61 = vpop.eup %2711 }
 0x2ff   : > { %v1729_v63 = vpop.f32.mrf.mxu1  ;;  %v1570_v32 = vpop.f32.mrf.mxu0 }
 0x300   : > { %v1571_v49 = vadd.f32 %v1570_v32, %v3755_v26  ;;  %2737 = vtanh.f32 %v1569_v10  ;;  %v3889_v39 = vpop.eup %2713 }
 0x301   : > { %v1731_v40 = vpop.f32.mrf.mxu1  ;;  %v1574_v51 = vpop.f32.mrf.mxu0 }
 0x302   : > { %v1575_v27 = vadd.f32 %v1574_v51, %v3749_v34  ;;  %2739 = vtanh.f32 %v1571_v49  ;;  %v3892_v59 = vpop.eup %2715 }
 0x303   : > { %v1735_v22 = vpop.f32.mrf.mxu1  ;;  %v1576_v41 = vpop.f32.mrf.mxu0 }
 0x304   : > { %v1577_v5 = vadd.f32 %v1576_v41, %v3749_v34  ;;  %2741 = vtanh.f32 %v1575_v27  ;;  %v3894_v55 = vpop.eup %2717  ;;  %v1736_v27 = vadd.f32 %v1735_v22, %v3749_v34 }
 0x305   : > { %v1737_v35 = vpop.f32.mrf.mxu1  ;;  %v1580_v56 = vpop.f32.mrf.mxu0 }
 0x306   : > { %v1581_v32 = vadd.f32 %v1580_v56, %v3751_v60  ;;  %2743 = vtanh.f32 %v1577_v5  ;;  %v3898_v10 = vpop.eup %2719  ;;  %v1738_v6 = vadd.f32 %v1737_v35, %v3749_v34  ;;  %v1732_v5 = vadd.f32 %v1731_v40, %v3755_v26 }
 0x307   : > { %v1741_v46 = vpop.f32.mrf.mxu1  ;;  %v1582_v51 = vpop.f32.mrf.mxu0  ;;  %v1726_v35 = vadd.f32 %v1725_v38, %v3753_v45  ;;  %v1724_v34 = vadd.f32 %v3855_v11, %v3753_v45  ;;  %v1720_v40 = vadd.f32 %v3847_v44, %v3759_v62  ;;  %v1714_v38 = vadd.f32 %v3837_v24, %v3757_v23 }
 0x308   : > { %v1742_v41 = vadd.f32 %v1741_v46, %v3751_v60  ;;  %v1583_v37 = vadd.f32 %v1582_v51, %v3751_v60  ;;  %2745 = vtanh.f32 %v1581_v32  ;;  %v3902_v49 = vpop.eup %2721  ;;  %v1730_v51 = vadd.f32 %v1729_v63, %v3755_v26 }
 0x309   : > { %v1743_v21 = vpop.f32.mrf.mxu1  ;;  %v3905_v25 = vpop.eup %2723  ;;  %v1718_v63 = vadd.f32 %v3841_v20, %v3759_v62  ;;  %v1712_v45 = vadd.f32 %v3833_v30, %v3757_v23  ;;  %v1708_v44 = vadd.f32 %v3829_v36, %v3769_v29  ;;  %v1706_v62 = vadd.f32 %v3825_v14, %v3769_v29 }
 0x30a   : > { %v1744_v56 = vadd.f32 %v1743_v21, %v3751_v60  ;;  %2747 = vtanh.f32 %v1583_v37  ;;  %v3908_v46 = vpop.eup %2725  ;;  %v1702_v24 = vadd.f32 %v3821_v48, %v3765_v18  ;;  %v1700_v23 = vadd.f32 %v3817_v53, %v3765_v18 }
 0x30b   : > { %v3911_v15 = vpop.eup %2727  ;;  %v1696_v36 = vadd.f32 %v3813_v42, %v3779_v28  ;;  %v1694_v29 = vadd.f32 %v3807_v54, %v3779_v28  ;;  %v1690_v48 = vadd.f32 %v3803_v47, %v3775_v3  ;;  %v1688_v53 = vadd.f32 %v3801_v4, %v3775_v3 }
 0x30c   : > { %2749 = vtanh.f32 %v1744_v56  ;;  %v3914_v60 = vpop.eup %2729  ;;  %v1684_v28 = vadd.f32 %v3797_v13, %v3789_v58  ;;  %v1682_v47 = vadd.f32 %v3793_v31, %v3789_v58  ;;  %v1678_v3 = vadd.f32 %v3791_v1, %v3785_v0 }
 0x30d   : > { %2751 = vtanh.f32 %v1742_v41  ;;  %v3918_v22 = vpop.eup %2731  ;;  %v1676_v13 = vadd.f32 %v3787_v9, %v3785_v0  ;;  %v1672_v58 = vadd.f32 %v3783_v52, %v3799_v33  ;;  %v1670_v1 = vadd.f32 %v3781_v43, %v3799_v33 }
 0x30e   : > { %2753 = vtanh.f32 %v1738_v6  ;;  %v2734_v21 = vpop.eup %2733  ;;  %v1666_v0 = vadd.f32 %v3777_v57, %v3795_v50  ;;  %v1664_v9 = vadd.f32 %v3773_v8, %v3795_v50  ;;  %v1660_v33 = vadd.f32 %v3771_v16, %v3810_v7 }
 0x30f   : > { %2755 = vtanh.f32 %v1736_v27  ;;  %v2736_v26 = vpop.eup %2735  ;;  %v1654_v50 = vadd.f32 %v3763_v19, %v3805_v12 }
 0x310   : > { %2757 = vtanh.f32 %v1732_v5  ;;  %v2738_v6 = vpop.eup %2737 }
 0x311   : > { %2759 = vtanh.f32 %v1730_v51  ;;  %v2740_v11 = vpop.eup %2739  ;;  %v1658_v51 = vadd.f32 %v3767_v17, %v3810_v7 }
 0x312   : > { %2761 = vtanh.f32 %v1726_v35  ;;  %v2742_v32 = vpop.eup %2741 }
 0x313   : > { %2763 = vtanh.f32 %v1724_v34  ;;  %v2744_v20 = vpop.eup %2743  ;;  %v4229_v34 = vld [vmem:[#allocation10_spill] sm:$0xff] }
 0x314   : > { %2765 = vtanh.f32 %v1720_v40  ;;  %v4230_v40 = vld [vmem:[#allocation11_spill] sm:$0xff] }
 0x315   : > { %2767 = vtanh.f32 %v1718_v63  ;;  %v2746_v41 = vpop.eup %2745  ;;  %v4231_v63 = vld [vmem:[#allocation12_spill] sm:$0xff] }
 0x316   : > { %2769 = vtanh.f32 %v1714_v38  ;;  %v4232_v38 = vld [vmem:[#allocation13_spill] sm:$0xff] }
 0x317   : > { %2771 = vtanh.f32 %v1712_v45  ;;  %v2748_v30 = vpop.eup %2747  ;;  %v4233_v45 = vld [vmem:[#allocation14_spill] sm:$0xff] }
 0x318   : > { %2773 = vtanh.f32 %v1708_v44  ;;  %1866 = vmatprep.subr.mxu0 %v2748_v30  ;;  %v4234_v44 = vld [vmem:[#allocation15_spill] sm:$0xff] }
 0x319   : > { %v2750_v37 = vpop.eup %2749  ;;  %2775 = vtanh.f32 %v1706_v62  ;;  %1867 = vmatpush1.msra.mxu0 %v2746_v41  ;;  %v4236_v41 = vld [vmem:[#allocation17_spill] sm:$0xff]  ;;  %v1811_v30 = vld [vmem:[%s4171_s8 + $0x8] sm:$0xff] }
 0x31a   : > { %v2752_v14 = vpop.eup %2751  ;;  %2777 = vtanh.f32 %v1702_v24  ;;  %1979 = vmatprep.subr.mxu1 %v2750_v37  ;;  %1868 = vmatprep.subr.mxu0 %v2744_v20  ;;  %v4235_v20 = vld [vmem:[#allocation16_spill] sm:$0xff]  ;;  %v1813_v37 = vld [vmem:[%s4171_s8 + $0x18] sm:$0xff] }
 0x31b   : > { %v2754_v18 = vpop.eup %2753  ;;  %2779 = vtanh.f32 %v1700_v23  ;;  %1980 = vmatpush1.msra.mxu1 %v2752_v14  ;;  %1869 = vmatpush1.msra.mxu0 %v2742_v32  ;;  %v1810_v32 = vld [vmem:[%s4171_s8] sm:$0xff]  ;;  %v4237_v23 = vmov 0.0   ;;  %v1815_v14 = vld [vmem:[%s4171_s8 + $0x28] sm:$0xff] }
 0x31c   : > { %v2756_v42 = vpop.eup %2755  ;;  %2781 = vtanh.f32 %v1696_v36  ;;  %1981 = vmatprep.subr.mxu1 %v2754_v18  ;;  %1870 = vmatprep.subr.mxu0 %v2740_v11  ;;  %v1812_v36 = vld [vmem:[%s4171_s8 + $0x10] sm:$0xff]  ;;  %v1817_v18 = vld [vmem:[%s4171_s8 + $0x38] sm:$0xff] }
 0x31d   : > { %v2758_v54 = vpop.eup %2757  ;;  %2783 = vtanh.f32 %v1694_v29  ;;  %1982 = vmatpush1.msra.mxu1 %v2756_v42  ;;  %1871 = vmatpush1.msra.mxu0 %v2738_v6  ;;  %v1814_v29 = vld [vmem:[%s4171_s8 + $0x20] sm:$0xff]  ;;  %v4034_v42 = vpop.permute.xlu0 %1863 }
 0x31e   : > { %v2760_v56 = vpop.eup %2759  ;;  %2785 = vtanh.f32 %v1690_v48  ;;  %1983 = vmatprep.subr.mxu1 %v2758_v54  ;;  %1872 = vmatprep.subr.mxu0 %v2736_v26  ;;  %v1816_v48 = vld [vmem:[%s4171_s8 + $0x30] sm:$0xff] }
 0x31f   : > { %v2762_v4 = vpop.eup %2761  ;;  %2787 = vtanh.f32 %v1688_v53  ;;  %1984 = vmatpush1.msra.mxu1 %v2760_v56  ;;  %1873 = vmatpush1.msra.mxu0 %v2734_v21  ;;  %v4032_v53 = vpop.permute.xlu1 %1858 }
 0x320   : > { %v2764_v27 = vpop.eup %2763  ;;  %2789 = vtanh.f32 %v1684_v28  ;;  %1985 = vmatprep.subr.mxu1 %v2762_v4  ;;  %1874 = vmatprep.subr.mxu0 %v3918_v22 }
 0x321   : > { %v2766_v31 = vpop.eup %2765  ;;  %2791 = vtanh.f32 %v1682_v47  ;;  %1986 = vmatpush1.msra.mxu1 %v2764_v27  ;;  %1875 = vmatpush1.msra.mxu0 %v3914_v60  ;;  %v4228_v60 = vld [vmem:[#allocation9_spill] sm:$0xff] }
 0x322   : > { %v2768_v5 = vpop.eup %2767  ;;  %2793 = vtanh.f32 %v1678_v3  ;;  %1987 = vmatprep.subr.mxu1 %v2766_v31  ;;  %1876 = vmatprep.subr.mxu0 %v3911_v15  ;;  %v1652_v15 = vadd.f32 %v3761_v2, %v3805_v12  ;;  %v4040_v3 = vpop.permute.xlu0 %1853 }
 0x323   : > { %v2770_v52 = vpop.eup %2769  ;;  %2795 = vtanh.f32 %v1676_v13  ;;  %1988 = vmatpush1.msra.mxu1 %v2768_v5  ;;  %1877 = vmatpush1.msra.mxu0 %v3908_v46  ;;  %v4036_v54 = vpop.permute.xlu1 %1848 }
 0x324   : > { %v2772_v43 = vpop.eup %2771  ;;  %2797 = vtanh.f32 %v1672_v58  ;;  %1989 = vmatprep.subr.mxu1 %v2770_v52  ;;  %1878 = vmatprep.subr.mxu0 %v3905_v25  ;;  %v4224_v25 = vld [vmem:[#allocation5_spill] sm:$0xff] }
 0x325   : > { %v2774_v57 = vpop.eup %2773  ;;  %2799 = vtanh.f32 %v1670_v1  ;;  %1990 = vmatpush1.msra.mxu1 %v2772_v43  ;;  %1879 = vmatpush1.msra.mxu0 %v3902_v49 }
 0x326   : > { %v2776_v8 = vpop.eup %2775  ;;  %2801 = vtanh.f32 %v1666_v0  ;;  %1991 = vmatprep.subr.mxu1 %v2774_v57  ;;  %1880 = vmatprep.subr.mxu0 %v3898_v10  ;;  %v4225_v10 = vld [vmem:[#allocation6_spill] sm:$0xff]  ;;  %v4050_v0 = vpop.permute.xlu0 %1843 }
 0x327   : > { %v2778_v16 = vpop.eup %2777  ;;  %2803 = vtanh.f32 %v1664_v9  ;;  %1992 = vmatpush1.msra.mxu1 %v2776_v8  ;;  %1881 = vmatpush1.msra.mxu0 %v3894_v55  ;;  %v4046_v31 = vpop.permute.xlu1 %1838 }
 0x328   : > { %v2780_v17 = vpop.eup %2779  ;;  %2805 = vtanh.f32 %v1660_v33  ;;  %1993 = vmatprep.subr.mxu1 %v2778_v16  ;;  %1882 = vmatprep.subr.mxu0 %v3892_v59  ;;  %v4226_v59 = vld [vmem:[#allocation7_spill] sm:$0xff] }
 0x329   : > { %v2782_v7 = vpop.eup %2781  ;;  %2807 = vtanh.f32 %v1658_v51  ;;  %1994 = vmatpush1.msra.mxu1 %v2780_v17  ;;  %1883 = vmatpush1.msra.mxu0 %v3889_v39  ;;  %v4227_v39 = vld [vmem:[#allocation8_spill] sm:$0xff] }
 0x32a   : > { %v2784_v19 = vpop.eup %2783  ;;  %2809 = vtanh.f32 %v1654_v50  ;;  %1995 = vmatprep.subr.mxu1 %v2782_v7  ;;  %1884 = vmatprep.subr.mxu0 %v3887_v61  ;;  %v4061_v16 = vpop.permute.xlu0 %1833 }
 0x32b   : > { %v2786_v2 = vpop.eup %2785  ;;  %2811 = vtanh.f32 %v1652_v15  ;;  %1996 = vmatpush1.msra.mxu1 %v2784_v19  ;;  %1885 = vmatpush1.msra.mxu0 %v4224_v25  ;;  %v4056_v57 = vpop.permute.xlu1 %1828 }
 0x32c   : > { %v2788_v12 = vpop.eup %2787  ;;  %1997 = vmatprep.subr.mxu1 %v2786_v2  ;;  %1886 = vmatprep.subr.mxu0 %v4225_v10 }
 0x32d   : > { %v2790_v55 = vpop.eup %2789  ;;  %1998 = vmatpush1.msra.mxu1 %v2788_v12  ;;  %1887 = vmatpush1.msra.mxu0 %v4226_v59 }
 0x32e   : > { %v2792_v49 = vpop.eup %2791  ;;  %1999 = vmatprep.subr.mxu1 %v2790_v55  ;;  %1888 = vmatprep.subr.mxu0 %v4227_v39 }
 0x32f   : > { %v2794_v46 = vpop.eup %2793  ;;  %2000 = vmatpush1.msra.mxu1 %v2792_v49  ;;  %1889 = vmatpush1.msra.mxu0 %v4228_v60 }
 0x330   : > { %v2796_v35 = vpop.eup %2795  ;;  %2001 = vmatprep.subr.mxu1 %v2794_v46  ;;  %1890 = vmatprep.subr.mxu0 %v4229_v34 }
 0x331   : > { %v2798_v61 = vpop.eup %2797  ;;  %2002 = vmatpush1.msra.mxu1 %v2796_v35  ;;  %1891 = vmatpush1.msra.mxu0 %v4230_v40 }
 0x332   : > { %v2800_v22 = vpop.eup %2799  ;;  %2003 = vmatprep.subr.mxu1 %v2798_v61  ;;  %1892 = vmatprep.subr.mxu0 %v4231_v63 }
 0x333   : > { %v2802_v21 = vpop.eup %2801  ;;  %2004 = vmatpush1.msra.mxu1 %v2800_v22  ;;  %1893 = vmatpush1.msra.mxu0 %v4232_v38 }
 0x334   : > { %v2804_v26 = vpop.eup %2803  ;;  %2005 = vmatprep.subr.mxu1 %v2802_v21  ;;  %1894 = vmatprep.subr.mxu0 %v4233_v45 }
 0x335   : > { %v2806_v6 = vpop.eup %2805  ;;  %2006 = vmatpush1.msra.mxu1 %v2804_v26  ;;  %1895 = vmatpush1.msra.mxu0 %v4234_v44 }
 0x336   : > { %v2808_v11 = vpop.eup %2807  ;;  %2007 = vmatprep.subr.mxu1 %v2806_v6  ;;  %1896 = vmatprep.subr.mxu0 %v4235_v20 }
 0x337   : > { %v2810_v62 = vpop.eup %2809  ;;  %2008 = vmatpush1.msra.mxu1 %v2808_v11  ;;  %1897 = vmatpush1.msra.mxu0 %v4236_v41 }
 0x338   : > { %v2812_v24 = vpop.eup %2811  ;;  %2009 = vmatprep.subr.mxu1 %v2810_v62  ;;  %1931 = vmatmul.mubr.f32.vlgmr.msra.gmra.mxu0 %v1810_v32 }
 0x339   : > { %2010 = vmatpush1.msra.mxu1 %v2812_v24  ;;  %1936 = vmatprep.mubr.f32.mxu0 %v4237_v23 }
 0x33a   : > { %2044 = vmatmul.mubr.f32.vlgmr.msra.gmra.mxu1 %v1810_v32 }
 0x33b   : > { %2049 = vmatprep.mubr.f32.mxu1 %v4237_v23 }
 0x33c   : > { %1937 = vmatmul.mubr.f32.gmra.mxu0 %v1811_v30 }
 0x33d   : > { %1942 = vmatprep.mubr.f32.mxu0 %v4237_v23 }
 0x33e   : > { %2050 = vmatmul.mubr.f32.gmra.mxu1 %v1811_v30 }
 0x33f   : > { %2055 = vmatprep.mubr.f32.mxu1 %v4237_v23 }
 0x340   : > { %1943 = vmatmul.mubr.f32.gmra.mxu0 %v1812_v36 }
 0x341   : > { %1948 = vmatprep.mubr.f32.mxu0 %v4237_v23 }
 0x342   : > { %2056 = vmatmul.mubr.f32.gmra.mxu1 %v1812_v36 }
 0x343   : > { %2061 = vmatprep.mubr.f32.mxu1 %v4237_v23 }
 0x344   : > { %1949 = vmatmul.mubr.f32.gmra.mxu0 %v1813_v37 }
 0x345   : > { %1954 = vmatprep.mubr.f32.mxu0 %v4237_v23 }
 0x346   : > { %2062 = vmatmul.mubr.f32.gmra.mxu1 %v1813_v37 }
 0x347   : > { %2067 = vmatprep.mubr.f32.mxu1 %v4237_v23 }
 0x348   : > { %1955 = vmatmul.mubr.f32.gmra.mxu0 %v1814_v29 }
 0x349   : > { %1960 = vmatprep.mubr.f32.mxu0 %v4237_v23 }
 0x34a   : > { %2068 = vmatmul.mubr.f32.gmra.mxu1 %v1814_v29 }
 0x34b   : > { %2073 = vmatprep.mubr.f32.mxu1 %v4237_v23 }
 0x34c   : > { %1961 = vmatmul.mubr.f32.gmra.mxu0 %v1815_v14 }
 0x34d   : > { %1966 = vmatprep.mubr.f32.mxu0 %v4237_v23 }
 0x34e   : > { %2074 = vmatmul.mubr.f32.gmra.mxu1 %v1815_v14 }
 0x34f   : > { %2079 = vmatprep.mubr.f32.mxu1 %v4237_v23 }
 0x350   : > { %1967 = vmatmul.mubr.f32.gmra.mxu0 %v1816_v48 }
 0x351   : > { %1972 = vmatprep.mubr.f32.mxu0 %v4237_v23 }
 0x352   : > { %2080 = vmatmul.mubr.f32.gmra.mxu1 %v1816_v48 }
 0x353   : > { %2085 = vmatprep.mubr.f32.mxu1 %v4237_v23 }
 0x354   : > { %1973 = vmatmul.mubr.f32.gmra.mxu0 %v1817_v18 }
 0x355   : > { %2202 = vmatprep.mubr.f32.mxu0 %v4237_v23 }
 0x356   : > { %2086 = vmatmul.mubr.f32.gmra.mxu1 %v1817_v18 }
 0x357   : > { %2273 = vmatprep.mubr.f32.mxu1 %v4237_v23 }
 0x3f8   : > { %v1932_v28 = vpop.f32.mrf.mxu0 }
 0x3f9   : > { %v1933_v8 = vadd.f32 %v1932_v28, %v4056_v57 }
 0x3fa   : > { %v4038_v47 = vpop.f32.mrf.mxu1  ;;  %v1934_v56 = vpop.f32.mrf.mxu0 }
 0x3fb   : > { %v1935_v15 = vadd.f32 %v1934_v56, %v4056_v57  ;;  %2813 = vtanh.f32 %v1933_v8 }
 0x3fc   : > { %v4042_v4 = vpop.f32.mrf.mxu1  ;;  %v1938_v13 = vpop.f32.mrf.mxu0 }
 0x3fd   : > { %v1939_v7 = vadd.f32 %v1938_v13, %v4061_v16  ;;  %2815 = vtanh.f32 %v1935_v15 }
 0x3fe   : > { %v4044_v27 = vpop.f32.mrf.mxu1  ;;  %v1940_v58 = vpop.f32.mrf.mxu0 }
 0x3ff   : > { %v1941_v2 = vadd.f32 %v1940_v58, %v4061_v16  ;;  %2817 = vtanh.f32 %v1939_v7 }
 0x400   : > { %v4048_v1 = vpop.f32.mrf.mxu1  ;;  %v1944_v5 = vpop.f32.mrf.mxu0 }
 0x401   : > { %v1945_v25 = vadd.f32 %v1944_v5, %v4046_v31  ;;  %2819 = vtanh.f32 %v1941_v2 }
 0x402   : > { %v4052_v52 = vpop.f32.mrf.mxu1  ;;  %v1946_v9 = vpop.f32.mrf.mxu0 }
 0x403   : > { %v1947_v10 = vadd.f32 %v1946_v9, %v4046_v31  ;;  %2821 = vtanh.f32 %v1945_v25 }
 0x404   : > { %v4054_v43 = vpop.f32.mrf.mxu1  ;;  %v1950_v33 = vpop.f32.mrf.mxu0 }
 0x405   : > { %v1951_v59 = vadd.f32 %v1950_v33, %v4050_v0  ;;  %2823 = vtanh.f32 %v1947_v10  ;;  %v2060_v15 = vadd.f32 %v4054_v43, %v4046_v31  ;;  %v2048_v43 = vadd.f32 %v4042_v4, %v4056_v57 }
 0x406   : > { %v4058_v51 = vpop.f32.mrf.mxu1  ;;  %v1952_v50 = vpop.f32.mrf.mxu0 }
 0x407   : > { %v1953_v39 = vadd.f32 %v1952_v50, %v4050_v0  ;;  %2825 = vtanh.f32 %v1951_v59  ;;  %v2064_v50 = vadd.f32 %v4058_v51, %v4050_v0 }
 0x408   : > { %v4064_v17 = vpop.f32.mrf.mxu1  ;;  %v1956_v19 = vpop.f32.mrf.mxu0 }
 0x409   : > { %v1957_v60 = vadd.f32 %v1956_v19, %v4036_v54  ;;  %2827 = vtanh.f32 %v1953_v39  ;;  %v4079_v24 = vpop.eup %2813  ;;  %v2066_v33 = vadd.f32 %v4064_v17, %v4050_v0  ;;  %v2054_v17 = vadd.f32 %v4048_v1, %v4061_v16 }
 0x40a   : > { %v2069_v12 = vpop.f32.mrf.mxu1  ;;  %v1958_v55 = vpop.f32.mrf.mxu0  ;;  %v2052_v0 = vadd.f32 %v4044_v27, %v4061_v16 }
 0x40b   : > { %v1959_v34 = vadd.f32 %v1958_v55, %v4036_v54  ;;  %2829 = vtanh.f32 %v1957_v60  ;;  %v4083_v36 = vpop.eup %2815  ;;  %v2070_v9 = vadd.f32 %v2069_v12, %v4036_v54  ;;  %v2124_v60 = vld [vmem:[%s4173_s10] sm:$0x1] }
 0x40c   : > { %v2071_v49 = vpop.f32.mrf.mxu1  ;;  %v1962_v46 = vpop.f32.mrf.mxu0 }
 0x40d   : > { %v1963_v40 = vadd.f32 %v1962_v46, %v4040_v3  ;;  %2831 = vtanh.f32 %v1959_v34  ;;  %v4087_v14 = vpop.eup %2817  ;;  %v2072_v5 = vadd.f32 %v2071_v49, %v4036_v54  ;;  %v2058_v54 = vadd.f32 %v4052_v52, %v4046_v31 }
 0x40e   : > { %v2075_v35 = vpop.f32.mrf.mxu1  ;;  %v1964_v61 = vpop.f32.mrf.mxu0  ;;  %v2046_v31 = vadd.f32 %v4038_v47, %v4056_v57 }
 0x40f   : > { %v1965_v63 = vadd.f32 %v1964_v61, %v4040_v3  ;;  %2833 = vtanh.f32 %v1963_v40  ;;  %v4090_v18 = vpop.eup %2819  ;;  %v2076_v13 = vadd.f32 %v2075_v35, %v4040_v3  ;;  %v4238_v40 = vld [vmem:[#allocation4_spill] sm:$0xff] }
 0x410   : > { %v2077_v22 = vpop.f32.mrf.mxu1  ;;  %v1968_v21 = vpop.f32.mrf.mxu0 }
 0x411   : > { %v1969_v38 = vadd.f32 %v1968_v21, %v4032_v53  ;;  %2835 = vtanh.f32 %v1965_v63  ;;  %v2078_v28 = vadd.f32 %v2077_v22, %v4040_v3  ;;  %v4093_v56 = vpop.eup %2821  ;;  %v2129_v22 = vpop.permute.xlu0 %2128 }
 0x412   : > { %v2081_v26 = vpop.f32.mrf.mxu1  ;;  %v1970_v6 = vpop.f32.mrf.mxu0  ;;  %v2134_v21 = vrot.slane %v2129_v22, %v4238_v40 }
 0x413   : > { %v1971_v45 = vadd.f32 %v1970_v6, %v4032_v53  ;;  %2837 = vtanh.f32 %v1969_v38  ;;  %v2082_v48 = vadd.f32 %v2081_v26, %v4032_v53  ;;  %v4096_v58 = vpop.eup %2823 }
 0x414   : > { %v2083_v11 = vpop.f32.mrf.mxu1  ;;  %v1974_v44 = vpop.f32.mrf.mxu0 }
 0x415   : > { %v1975_v32 = vadd.f32 %v1974_v44, %v4034_v42  ;;  %2839 = vtanh.f32 %v1971_v45  ;;  %v2084_v37 = vadd.f32 %v2083_v11, %v4032_v53 }
 0x416   : > { %v2087_v62 = vpop.f32.mrf.mxu1  ;;  %v1976_v20 = vpop.f32.mrf.mxu0 }
 0x417   : > { %v2088_v41 = vadd.f32 %v2087_v62, %v4034_v42  ;;  %v1977_v23 = vadd.f32 %v1976_v20, %v4034_v42  ;;  %2841 = vtanh.f32 %v1975_v32 }
 0x418   : > { %v2089_v30 = vpop.f32.mrf.mxu1 }
 0x419   : > { %v2090_v29 = vadd.f32 %v2089_v30, %v4034_v42  ;;  %2843 = vtanh.f32 %v1977_v23  ;;  %v2826_v42 = vpop.eup %2825 }
 0x41a   : > { %v2828_v53 = vpop.eup %2827 }
 0x41b   : > { %2845 = vtanh.f32 %v2090_v29  ;;  %v2830_v8 = vpop.eup %2829 }
 0x41c   : > { %2847 = vtanh.f32 %v2088_v41  ;;  %v2832_v3 = vpop.eup %2831 }
 0x41d   : > { %2849 = vtanh.f32 %v2084_v37  ;;  %v2834_v7 = vpop.eup %2833 }
 0x41e   : > { %2851 = vtanh.f32 %v2082_v48  ;;  %v2836_v19 = vpop.eup %2835 }
 0x41f   : > { %2853 = vtanh.f32 %v2078_v28 }
 0x420   : > { %2855 = vtanh.f32 %v2076_v13  ;;  %v2838_v2 = vpop.eup %2837 }
 0x421   : > { %2857 = vtanh.f32 %v2072_v5 }
 0x422   : > { %2859 = vtanh.f32 %v2070_v9  ;;  %v2840_v51 = vpop.eup %2839 }
 0x423   : > { %2861 = vtanh.f32 %v2066_v33 }
 0x424   : > { %2863 = vtanh.f32 %v2064_v50  ;;  %v2842_v12 = vpop.eup %2841 }
 0x425   : > { %2865 = vtanh.f32 %v2060_v15 }
 0x426   : > { %2867 = vtanh.f32 %v2058_v54  ;;  %v2844_v52 = vpop.eup %2843 }
 0x427   : > { %2869 = vtanh.f32 %v2054_v17  ;;  %2154 = vmatprep.subr.mxu0 %v2844_v52 }
 0x428   : > { %v2846_v25 = vpop.eup %2845  ;;  %2871 = vtanh.f32 %v2052_v0  ;;  %2155 = vmatpush1.msra.mxu0 %v2842_v12 }
 0x429   : > { %v2848_v1 = vpop.eup %2847  ;;  %2873 = vtanh.f32 %v2048_v43  ;;  %2225 = vmatprep.subr.mxu1 %v2846_v25  ;;  %2156 = vmatprep.subr.mxu0 %v2840_v51 }
 0x42a   : > { %v2850_v27 = vpop.eup %2849  ;;  %2875 = vtanh.f32 %v2046_v31  ;;  %2226 = vmatpush1.msra.mxu1 %v2848_v1  ;;  %2157 = vmatpush1.msra.mxu0 %v2838_v2  ;;  %v4241_v1 = vld [vmem:[#allocation3_spill] sm:$0xff] }
 0x42b   : > { %v2852_v4 = vpop.eup %2851  ;;  %2227 = vmatprep.subr.mxu1 %v2850_v27  ;;  %2158 = vmatprep.subr.mxu0 %v2836_v19 }
 0x42c   : > { %v2854_v16 = vpop.eup %2853  ;;  %2228 = vmatpush1.msra.mxu1 %v2852_v4  ;;  %2159 = vmatpush1.msra.mxu0 %v2834_v7 }
 0x42d   : > { %v2856_v47 = vpop.eup %2855  ;;  %2229 = vmatprep.subr.mxu1 %v2854_v16  ;;  %2160 = vmatprep.subr.mxu0 %v2832_v3 }
 0x42e   : > { %v2858_v57 = vpop.eup %2857  ;;  %2230 = vmatpush1.msra.mxu1 %v2856_v47  ;;  %2161 = vmatpush1.msra.mxu0 %v2830_v8 }
 0x42f   : > { %v2860_v55 = vpop.eup %2859  ;;  %2231 = vmatprep.subr.mxu1 %v2858_v57  ;;  %2162 = vmatprep.subr.mxu0 %v2828_v53 }
 0x430   : > { %v2862_v10 = vpop.eup %2861  ;;  %2232 = vmatpush1.msra.mxu1 %v2860_v55  ;;  %2163 = vmatpush1.msra.mxu0 %v2826_v42  ;;  %v2904_v42 = vmov 1966171168  }
 0x431   : > { %v2864_v49 = vpop.eup %2863  ;;  %2233 = vmatprep.subr.mxu1 %v2862_v10  ;;  %2164 = vmatprep.subr.mxu0 %v4096_v58  ;;  %v2343_v9 = vunpack.c.l.s4 %v2904_v42 }
 0x432   : > { %v2866_v59 = vpop.eup %2865  ;;  %2234 = vmatpush1.msra.mxu1 %v2864_v49  ;;  %2165 = vmatpush1.msra.mxu0 %v4093_v56 }
 0x433   : > { %v2868_v46 = vpop.eup %2867  ;;  %2235 = vmatprep.subr.mxu1 %v2866_v59  ;;  %2166 = vmatprep.subr.mxu0 %v4090_v18  ;;  %v2344_v15 = vunpack.c.0.s8 %v2343_v9 }
 0x434   : > { %v2870_v39 = vpop.eup %2869  ;;  %2236 = vmatpush1.msra.mxu1 %v2868_v46  ;;  %2167 = vmatpush1.msra.mxu0 %v4087_v14 }
 0x435   : > { %v2872_v35 = vpop.eup %2871  ;;  %2237 = vmatprep.subr.mxu1 %v2870_v39  ;;  %2168 = vmatprep.subr.mxu0 %v4083_v36  ;;  %v2347_v27 = vsub.s32 %v2344_v15, %v4241_v1 }
 0x436   : > { %v2874_v61 = vpop.eup %2873  ;;  %2238 = vmatpush1.msra.mxu1 %v2872_v35  ;;  %2169 = vmatpush1.msra.mxu0 %v4079_v24 }
 0x437   : > { %v2876_v34 = vpop.eup %2875  ;;  %2239 = vmatprep.subr.mxu1 %v2874_v61  ;;  %2466 = vmatmul.mubr.msk.f32.vlgmr.msra.gmra.mxu0 %vm877_vm0, %v2124_v60 }
 0x438   : > { %2240 = vmatpush1.msra.mxu1 %v2876_v34 }
 0x439   : > { %2467 = vmatmul.mubr.msk.f32.vlgmr.msra.gmra.mxu1 %vm877_vm0, %v2124_v60 }
 0x4f7   : > { %v2204_v63 = vpop.f32.mrf.mxu0 }
 0x4f8   : > { %v4128_v26 = vadd.f32 %v2204_v63, %v2134_v21 }
 0x4f9   : > { %v2275_v38 = vpop.f32.mrf.mxu1  ;;  %v2206_v45 = vpop.f32.mrf.mxu0 }
 0x4fa   : > { %v4130_v6 = vadd.f32 %v2275_v38, %v2134_v21  ;;  %v2284_v11 = vmin.f32 %v4128_v26, 20.0  ;;  %v4133_v44 = vadd.f32 %v2206_v45, %v2134_v21  ;;  %vm2280_vm2 = vcmp.gt.f32.partialorder %v4128_v26, 20.0 }
 0x4fb   : > { %v2277_v32 = vpop.f32.mrf.mxu1 }
 0x4fc   : > { %v2286_v62 = vmin.f32 %v4130_v6, 20.0  ;;  %v4136_v20 = vadd.f32 %v2277_v32, %v2134_v21  ;;  %v2288_v24 = vmul.f32 1.442695, %v2284_v11  ;;  %v2285_v41 = vmin.f32 %v4133_v44, 20.0 }
 0x4fd   : > { %vm2281_vm4 = vcmp.gt.f32.partialorder %v4133_v44, 20.0  ;;  %vm2282_vm7 = vcmp.gt.f32.partialorder %v4130_v6, 20.0 }
 0x4fe   : > { %v2292_v23 = vmul.f32 1.442695, %v2286_v62  ;;  %v2287_v30 = vmin.f32 %v4136_v20, 20.0  ;;  %2877 = vpow2.f32 %v2288_v24  ;;  %v2290_v36 = vmul.f32 1.442695, %v2285_v41 }
 0x4ff   : > { %vm2283_vm8 = vcmp.gt.f32.partialorder %v4136_v20, 20.0 }
 0x500   : > { %2879 = vpow2.f32 %v2292_v23  ;;  %v2294_v37 = vmul.f32 1.442695, %v2287_v30 }
 0x501   : > { %2881 = vpow2.f32 %v2290_v36 }
 0x502   : > { %2883 = vpow2.f32 %v2294_v37 }
 0x50b   : > { %v2878_v29 = vpop.eup %2877 }
 0x50c   : > { %v2296_v48 = vadd.f32 1.0, %v2878_v29  ;;  %v2299_v5 = vmul.f32 -0.5, %v2878_v29  ;;  %v2302_v3 = vand.u32 2147483647, %v2878_v29 }
 0x50d   : > { %v2880_v14 = vpop.eup %2879 }
 0x50e   : > { %v2882_v18 = vpop.eup %2881  ;;  %v2314_v28 = vadd.f32 1.0, %v2880_v14  ;;  %2885 = vlog2.f32 %v2296_v48  ;;  %v2317_v53 = vmul.f32 -0.5, %v2880_v14  ;;  %v2300_v8 = vadd.f32 1.0, %v2299_v5 }
 0x50f   : > { %v2884_v56 = vpop.eup %2883  ;;  %v2305_v13 = vadd.f32 1.0, %v2882_v18  ;;  %v2308_v33 = vmul.f32 -0.5, %v2882_v18  ;;  %v2320_v17 = vand.u32 2147483647, %v2880_v14  ;;  %v2311_v2 = vand.u32 2147483647, %v2882_v18 }
 0x510   : > { %2887 = vlog2.f32 %v2314_v28  ;;  %v2323_v58 = vadd.f32 1.0, %v2884_v56  ;;  %v2326_v50 = vmul.f32 -0.5, %v2884_v56  ;;  %v2318_v7 = vadd.f32 1.0, %v2317_v53 }
 0x511   : > { %2889 = vlog2.f32 %v2305_v13  ;;  %v2309_v54 = vadd.f32 1.0, %v2308_v33  ;;  %v2301_v43 = vmul.f32 %v2878_v29, %v2300_v8  ;;  %vm4140_vm1 = vcmp.lt.f32.partialorder %v2302_v3, 0.0004427343 }
 0x512   : > { %2891 = vlog2.f32 %v2323_v58  ;;  %v2327_v12 = vadd.f32 1.0, %v2326_v50  ;;  %v2329_v4 = vand.u32 2147483647, %v2884_v56  ;;  %v2319_v47 = vmul.f32 %v2880_v14, %v2318_v7 }
 0x513   : > { %v2310_v55 = vmul.f32 %v2882_v18, %v2309_v54  ;;  %vm2321_vm3 = vcmp.lt.f32.partialorder %v2320_v17, 0.0004427343  ;;  %vm2312_vm5 = vcmp.lt.f32.partialorder %v2311_v2, 0.0004427343 }
 0x514   : > { %v2328_v39 = vmul.f32 %v2884_v56, %v2327_v12  ;;  %vm2330_vm6 = vcmp.lt.f32.partialorder %v2329_v4, 0.0004427343 }
 0x51b   : > { %v2886_v19 = vpop.eup %2885 }
 0x51c   : > { %v2298_v51 = vmul.f32 0.6931472, %v2886_v19 }
 0x51d   : > { %v2888_v0 = vpop.eup %2887 }
 0x51e   : > { %v2890_v31 = vpop.eup %2889  ;;  %v2316_v25 = vmul.f32 0.6931472, %v2888_v0  ;;  %v2304_v16 = vsel %vm4140_vm1, %v2301_v43, %v2298_v51 }
 0x51f   : > { %v2307_v57 = vmul.f32 0.6931472, %v2890_v31  ;;  %v2892_v10 = vpop.eup %2891  ;;  %v2332_v35 = vsel %vm2280_vm2, %v4128_v26, %v2304_v16  ;;  %v4242_v26 = vlaneseq }
 0x520   : > { %v2322_v49 = vsel %vm2321_vm3, %v2319_v47, %v2316_v25  ;;  %v2325_v46 = vmul.f32 0.6931472, %v2892_v10 }
 0x521   : > { %v2313_v59 = vsel %vm2312_vm5, %v2310_v55, %v2307_v57  ;;  %v2334_v22 = vsel %vm2282_vm7, %v4130_v6, %v2322_v49  ;;  %vm2367_vm9 = vcmp.lt.s32.totalorder %v4242_v26, 512 }
 0x522   : > { %v2333_v60 = vsel %vm2281_vm4, %v4133_v44, %v2313_v59  ;;  %v2331_v34 = vsel %vm2330_vm6, %v2328_v39, %v2325_v46 }
 0x523   : > { %v2340_v61 = vcombine.low %v2332_v35, %v2333_v60  ;;  %v2335_v40 = vsel %vm2283_vm8, %v4136_v20, %v2331_v34 }
 0x524   : > { %v2341_v63 = vcombine.low %v2334_v22, %v2335_v40 }
 0x525   : > { %v2348_v21 = vrot.slane %v2340_v61, %v2347_v27 }
 0x526   : > { %v2355_v38 = vrot.slane %v2341_v63, %v2347_v27 }
 0x528   : > { %v2356_v45 = vcombine.low %v2348_v21, %v2355_v38 }
 0x52a   : > { %v2363_v11 = vrot.slane %v2356_v45, %v2347_v27 }
 0x52c   : > { %2369 = vst.msk [vmem:[%s431_s21] sm:$0xf] %vm2367_vm9, %v2363_v11 }
 0x52d PF: > { %s24_s23 = sadd.s32 1, %s2899_s23  }
 0x52e   : > { %p21_p4 = scmp.ge.s32.totalorder %s24_s23, 4  }
 0x530   :  { %23 = sbr.rel (!%p21_p4) target bundleno = 3 (0x3), region = 101 }

</bundles_post_ra>
